<compile_context>
chip_gen: v7x
topology: tpu7x:2x2x1
jax: 0.10.0
libtpu: 0.0.40
codegen_flags: <defaults>
</compile_context>

<pallas_src>
import jax
import jax.numpy as jnp
from jax.experimental import pallas as pl
from jax.experimental.pallas import tpu as pltpu

EMBEDDING_SIZE = 69
MLP_WIDTH = 256
MLP_DEPTH = 4
CFG_TOTAL_BONES = 24                 # cfg.total_bones (SMPL)
TOTAL_BONES = CFG_TOTAL_BONES - 1    # 23
OUT_DIM = 3 * TOTAL_BONES            # 69
LANE = 128                           # lane stride per component / matrix entry
LAST_W = 3 * LANE                    # 384: packed last-layer width (x|y|z slabs)
OUT_W = 9 * LANE                     # 1152: lane-dense output width
MAX_BATCH_TILE = 512                 # rows per grid step when B is large


# ---------------------------------------------------------------------------
# Fused kernel: MLP (MXU) + Rodrigues (VPU/EUP), everything resident in VMEM.
# ---------------------------------------------------------------------------
def _fused_kernel(x_ref,
                  w0, b0, w1, b1, w2, b2, w3, b3,
                  wl, bl,
                  out_ref):
    def dense(h, w, b):
        return jnp.dot(h, w[...].astype(jnp.float32),
                       preferred_element_type=jnp.float32) + b[...]

    h = x_ref[...]
    h = jnp.maximum(dense(h, w0, b0), 0.0)
    h = jnp.maximum(dense(h, w1, b1), 0.0)
    h = jnp.maximum(dense(h, w2, b2), 0.0)
    h = jnp.maximum(dense(h, w3, b3), 0.0)

    # Single packed final matmul; each rotation-vector component occupies a
    # full 128-lane slab (lanes >= TOTAL_BONES are zero-padded).
    r = dense(h, wl, bl)                           # (TB, 384)
    rx = r[:, 0 * LANE:1 * LANE]
    ry = r[:, 1 * LANE:2 * LANE]
    rz = r[:, 2 * LANE:3 * LANE]

    # Rodrigues formula, elementwise on lane-aligned (TB, 128) slabs.
    sumsq = rx * rx + ry * ry + rz * rz + 1e-5
    inv_theta = jax.lax.rsqrt(sumsq)               # EUP slot (free vs. VPU div)
    theta = sumsq * inv_theta                      # == sqrt(sumsq)
    rx = rx * inv_theta
    ry = ry * inv_theta
    rz = rz * inv_theta
    c = jnp.cos(theta)
    s = jnp.sin(theta)
    one_c = 1.0 - c

    entries = (
        rx * rx + (1.0 - rx * rx) * c,
        rx * ry * one_c - rz * s,
        rx * rz * one_c + ry * s,
        rx * ry * one_c + rz * s,
        ry * ry + (1.0 - ry * ry) * c,
        ry * rz * one_c - rx * s,
        rx * rz * one_c - ry * s,
        ry * rz * one_c + rx * s,
        rz * rz + (1.0 - rz * rz) * c,
    )
    # One lane-dense (TB, 1152) store; entry e lives at lanes [e*128, (e+1)*128).
    out_ref[...] = jnp.concatenate(entries, axis=-1)


def _fused_forward(x, kernel_params):
    """x: (B_pad, E) f32 with B_pad % tile == 0 -> (B_pad, OUT_W) f32."""
    B_pad, E = x.shape
    TB = min(B_pad, MAX_BATCH_TILE)
    grid = (B_pad // TB,)

    in_specs = [pl.BlockSpec((TB, E), lambda i: (i, 0))]
    # Constant index maps: weights/biases stay VMEM-resident across grid steps.
    in_specs += [pl.BlockSpec(p.shape, lambda i: (0, 0)) for p in kernel_params]
    out_specs = pl.BlockSpec((TB, OUT_W), lambda i: (i, 0))

    return pl.pallas_call(
        _fused_kernel,
        out_shape=jax.ShapeDtypeStruct((B_pad, OUT_W), jnp.float32),
        grid=grid,
        in_specs=in_specs,
        out_specs=out_specs,
        compiler_params=pltpu.CompilerParams(
            dimension_semantics=("parallel",)),
    )(x, *kernel_params)


# ---------------------------------------------------------------------------
# Parameters (torch-equivalent init) and kernel-layout preparation.
# ---------------------------------------------------------------------------
def init_params(key, embedding_size=EMBEDDING_SIZE):
    """Synthetic init matching the module's layer shapes (weights as (in, out))."""
    dims = [embedding_size] + [MLP_WIDTH] * MLP_DEPTH + [OUT_DIM]
    params = []
    keys = jax.random.split(key, 2 * (len(dims) - 1))
    for i in range(len(dims) - 1):
        fan_in, fan_out = dims[i], dims[i + 1]
        kw, kb = keys[2 * i], keys[2 * i + 1]
        if i == len(dims) - 2:
            # last layer: weight ~ U(-1e-5, 1e-5), bias = 0 (as in the module)
            w = jax.random.uniform(kw, (fan_in, fan_out), jnp.float32, -1e-5, 1e-5)
            b = jnp.zeros((1, fan_out), jnp.float32)
        else:
            bound = 1.0 / jnp.sqrt(float(fan_in))
            w = jax.random.uniform(kw, (fan_in, fan_out), jnp.float32, -bound, bound)
            b = jax.random.uniform(kb, (1, fan_out), jnp.float32, -bound, bound)
        params.append((w, b))
    return params


def prepare_kernel_params(params):
    """Torch-layout params -> flat tuple in kernel layout.

    Hidden weights -> bf16 (DMA-bytes win; cast back to f32 in VMEM).
    Last layer packed into ONE (W, 384) weight / (1, 384) bias where component
    c (x/y/z, torch column order is bone-major) occupies lanes
    [c*128, c*128 + 23); remaining lanes are zero.
    """
    hidden, (w_last, b_last) = params[:-1], params[-1]
    flat = []
    for w, b in hidden:
        flat += [w.astype(jnp.bfloat16), b.astype(jnp.float32)]

    W = w_last.shape[0]
    wl = jnp.zeros((W, LAST_W), jnp.float32)
    bl = jnp.zeros((1, LAST_W), jnp.float32)
    for comp in range(3):
        lo = comp * LANE
        wl = wl.at[:, lo:lo + TOTAL_BONES].set(w_last[:, comp::3].astype(jnp.float32))
        bl = bl.at[:, lo:lo + TOTAL_BONES].set(b_last[:, comp::3].astype(jnp.float32))
    flat += [wl, bl]
    return tuple(flat)


# ---------------------------------------------------------------------------
# Module wrapper
# ---------------------------------------------------------------------------
def body_pose_refiner_forward(pose_input, kernel_params, ts_embedded=None):
    if ts_embedded is not None:
        pose_input = jnp.concatenate([pose_input, ts_embedded], axis=-1)
    if pose_input.shape[-1] != kernel_params[0].shape[0]:
        raise ValueError(
            f"input width {pose_input.shape[-1]} != first-layer weight rows "
            f"{kernel_params[0].shape[0]}; build params with "
            "embedding_size = pose width (+ ts width when ts_embedded is used).")

    B = pose_input.shape[0]
    b8 = ((B + 7) // 8) * 8                      # sublane multiple
    TB = min(b8, MAX_BATCH_TILE)
    B_pad = ((b8 + TB - 1) // TB) * TB           # tile multiple for the grid
    x = pose_input.astype(jnp.float32)
    if B_pad != B:
        x = jnp.zeros((B_pad, x.shape[1]), jnp.float32).at[:B].set(x)

    out = _fused_forward(x, kernel_params)       # (B_pad, OUT_W)
    out = out[:B].reshape(B, 9, LANE)[:, :, :TOTAL_BONES]           # (B, 9, 23)
    Rs = out.reshape(B, 3, 3, TOTAL_BONES).transpose(0, 3, 1, 2)    # (B, 23, 3, 3)
    return {'Rs': Rs}


# ---------------------------------------------------------------------------
# Pure-JAX reference (same effective weights) for a correctness check.
# ---------------------------------------------------------------------------
def _ref_forward(pose_input, kernel_params):
    (w0, b0, w1, b1, w2, b2, w3, b3, wl, bl) = kernel_params
    h = pose_input.astype(jnp.float32)
    for w, b in ((w0, b0), (w1, b1), (w2, b2), (w3, b3)):
        h = jnp.maximum(h @ w.astype(jnp.float32) + b, 0.0)
    rx = h @ wl[:, 0:TOTAL_BONES] + bl[:, 0:TOTAL_BONES]
    ry = h @ wl[:, LANE:LANE + TOTAL_BONES] + bl[:, LANE:LANE + TOTAL_BONES]
    rz = h @ wl[:, 2 * LANE:2 * LANE + TOTAL_BONES] + bl[:, 2 * LANE:2 * LANE + TOTAL_BONES]
    theta = jnp.sqrt(1e-5 + rx * rx + ry * ry + rz * rz)
    rx, ry, rz = rx / theta, ry / theta, rz / theta
    c = jnp.cos(theta)
    s = jnp.sin(theta)
    one_c = 1.0 - c
    rows = jnp.stack([
        rx * rx + (1.0 - rx * rx) * c, rx * ry * one_c - rz * s, rx * rz * one_c + ry * s,
        rx * ry * one_c + rz * s, ry * ry + (1.0 - ry * ry) * c, ry * rz * one_c - rx * s,
        rx * rz * one_c - ry * s, ry * rz * one_c + rx * s, rz * rz + (1.0 - rz * rz) * c,
    ], axis=-1)                                    # (B, 23, 9)
    return rows.reshape(-1, TOTAL_BONES, 3, 3)


if __name__ == "__main__":
    key = jax.random.PRNGKey(0)
    k_params, k_input = jax.random.split(key)

    torch_params = init_params(k_params)
    kparams = prepare_kernel_params(torch_params)

    B = 2
    pose_input = jax.random.normal(k_input, (B, EMBEDDING_SIZE), jnp.float32)

    out = body_pose_refiner_forward(pose_input, kparams)
    Rs = jax.block_until_ready(out['Rs'])

    ref = _ref_forward(pose_input, kparams)
    assert Rs.shape == (B, TOTAL_BONES, 3, 3), Rs.shape
    assert jnp.allclose(Rs, ref, atol=1e-4, rtol=1e-4), \
        float(jnp.max(jnp.abs(Rs - ref)))

    print("KERNEL_OK")
</pallas_src>

<mosaic_0001>
module attributes {stable_mosaic.version = 11 : i64} {
  func.func @_fused_kernel(%arg0: i32, %arg1: memref<8x69xf32, #tpu.memory_space<vmem>>, %arg2: memref<69x256xbf16, #tpu.memory_space<vmem>>, %arg3: memref<1x256xf32, #tpu.memory_space<vmem>>, %arg4: memref<256x256xbf16, #tpu.memory_space<vmem>>, %arg5: memref<1x256xf32, #tpu.memory_space<vmem>>, %arg6: memref<256x256xbf16, #tpu.memory_space<vmem>>, %arg7: memref<1x256xf32, #tpu.memory_space<vmem>>, %arg8: memref<256x256xbf16, #tpu.memory_space<vmem>>, %arg9: memref<1x256xf32, #tpu.memory_space<vmem>>, %arg10: memref<256x384xf32, #tpu.memory_space<vmem>>, %arg11: memref<1x384xf32, #tpu.memory_space<vmem>>, %arg12: memref<8x1152xf32, #tpu.memory_space<vmem>>) attributes {dimension_semantics = [#tpu.dimension_semantics<parallel>], iteration_bounds = array<i64: 1>, scalar_prefetch = 0 : i64, scratch_operands = 0 : i64, tpu.core_type = #tpu.core_type<tc>, window_params = [{transform_indices = @transform_0, window_bounds = array<i64: 8, 69>}, {pipeline_mode = #tpu.pipeline_mode<synchronous>, transform_indices = @transform_1, window_bounds = array<i64: 69, 256>}, {pipeline_mode = #tpu.pipeline_mode<synchronous>, transform_indices = @transform_2, window_bounds = array<i64: 1, 256>}, {pipeline_mode = #tpu.pipeline_mode<synchronous>, transform_indices = @transform_3, window_bounds = array<i64: 256, 256>}, {pipeline_mode = #tpu.pipeline_mode<synchronous>, transform_indices = @transform_4, window_bounds = array<i64: 1, 256>}, {pipeline_mode = #tpu.pipeline_mode<synchronous>, transform_indices = @transform_5, window_bounds = array<i64: 256, 256>}, {pipeline_mode = #tpu.pipeline_mode<synchronous>, transform_indices = @transform_6, window_bounds = array<i64: 1, 256>}, {pipeline_mode = #tpu.pipeline_mode<synchronous>, transform_indices = @transform_7, window_bounds = array<i64: 256, 256>}, {pipeline_mode = #tpu.pipeline_mode<synchronous>, transform_indices = @transform_8, window_bounds = array<i64: 1, 256>}, {pipeline_mode = #tpu.pipeline_mode<synchronous>, transform_indices = @transform_9, window_bounds = array<i64: 256, 384>}, {pipeline_mode = #tpu.pipeline_mode<synchronous>, transform_indices = @transform_10, window_bounds = array<i64: 1, 384>}, {transform_indices = @transform_11, window_bounds = array<i64: 8, 1152>}]} {
    %c0 = arith.constant 0 : index
    %c0_0 = arith.constant 0 : index
    %0 = vector.load %arg1[%c0, %c0_0] : memref<8x69xf32, #tpu.memory_space<vmem>>, vector<8x69xf32>
    %c0_1 = arith.constant 0 : index
    %c0_2 = arith.constant 0 : index
    %1 = vector.load %arg2[%c0_1, %c0_2] : memref<69x256xbf16, #tpu.memory_space<vmem>>, vector<69x256xbf16>
    %2 = arith.extf %1 : vector<69x256xbf16> to vector<69x256xf32>
    %cst = arith.constant dense<0.000000e+00> : vector<8x256xf32>
    %3 = tpu.matmul %0, %2, %cst {dimension_numbers = #tpu.dot_dimension_numbers<[1], [0], [0], [1], [0, 0, 1, 1], [], []>} : vector<8x69xf32>, vector<69x256xf32>, vector<8x256xf32> -> vector<8x256xf32>
    %c0_3 = arith.constant 0 : index
    %c0_4 = arith.constant 0 : index
    %4 = vector.load %arg3[%c0_3, %c0_4] : memref<1x256xf32, #tpu.memory_space<vmem>>, vector<1x256xf32>
    %5 = vector.broadcast %4 : vector<1x256xf32> to vector<8x256xf32>
    %6 = arith.addf %3, %5 : vector<8x256xf32>
    %cst_5 = arith.constant 0.000000e+00 : f32
    %7 = vector.broadcast %cst_5 : f32 to vector<8x256xf32>
    %8 = arith.maximumf %6, %7 : vector<8x256xf32>
    %c0_6 = arith.constant 0 : index
    %c0_7 = arith.constant 0 : index
    %9 = vector.load %arg4[%c0_6, %c0_7] : memref<256x256xbf16, #tpu.memory_space<vmem>>, vector<256x256xbf16>
    %10 = arith.extf %9 : vector<256x256xbf16> to vector<256x256xf32>
    %cst_8 = arith.constant dense<0.000000e+00> : vector<8x256xf32>
    %11 = tpu.matmul %8, %10, %cst_8 {dimension_numbers = #tpu.dot_dimension_numbers<[1], [0], [0], [1], [0, 0, 1, 1], [], []>} : vector<8x256xf32>, vector<256x256xf32>, vector<8x256xf32> -> vector<8x256xf32>
    %c0_9 = arith.constant 0 : index
    %c0_10 = arith.constant 0 : index
    %12 = vector.load %arg5[%c0_9, %c0_10] : memref<1x256xf32, #tpu.memory_space<vmem>>, vector<1x256xf32>
    %13 = vector.broadcast %12 : vector<1x256xf32> to vector<8x256xf32>
    %14 = arith.addf %11, %13 : vector<8x256xf32>
    %cst_11 = arith.constant 0.000000e+00 : f32
    %15 = vector.broadcast %cst_11 : f32 to vector<8x256xf32>
    %16 = arith.maximumf %14, %15 : vector<8x256xf32>
    %c0_12 = arith.constant 0 : index
    %c0_13 = arith.constant 0 : index
    %17 = vector.load %arg6[%c0_12, %c0_13] : memref<256x256xbf16, #tpu.memory_space<vmem>>, vector<256x256xbf16>
    %18 = arith.extf %17 : vector<256x256xbf16> to vector<256x256xf32>
    %cst_14 = arith.constant dense<0.000000e+00> : vector<8x256xf32>
    %19 = tpu.matmul %16, %18, %cst_14 {dimension_numbers = #tpu.dot_dimension_numbers<[1], [0], [0], [1], [0, 0, 1, 1], [], []>} : vector<8x256xf32>, vector<256x256xf32>, vector<8x256xf32> -> vector<8x256xf32>
    %c0_15 = arith.constant 0 : index
    %c0_16 = arith.constant 0 : index
    %20 = vector.load %arg7[%c0_15, %c0_16] : memref<1x256xf32, #tpu.memory_space<vmem>>, vector<1x256xf32>
    %21 = vector.broadcast %20 : vector<1x256xf32> to vector<8x256xf32>
    %22 = arith.addf %19, %21 : vector<8x256xf32>
    %cst_17 = arith.constant 0.000000e+00 : f32
    %23 = vector.broadcast %cst_17 : f32 to vector<8x256xf32>
    %24 = arith.maximumf %22, %23 : vector<8x256xf32>
    %c0_18 = arith.constant 0 : index
    %c0_19 = arith.constant 0 : index
    %25 = vector.load %arg8[%c0_18, %c0_19] : memref<256x256xbf16, #tpu.memory_space<vmem>>, vector<256x256xbf16>
    %26 = arith.extf %25 : vector<256x256xbf16> to vector<256x256xf32>
    %cst_20 = arith.constant dense<0.000000e+00> : vector<8x256xf32>
    %27 = tpu.matmul %24, %26, %cst_20 {dimension_numbers = #tpu.dot_dimension_numbers<[1], [0], [0], [1], [0, 0, 1, 1], [], []>} : vector<8x256xf32>, vector<256x256xf32>, vector<8x256xf32> -> vector<8x256xf32>
    %c0_21 = arith.constant 0 : index
    %c0_22 = arith.constant 0 : index
    %28 = vector.load %arg9[%c0_21, %c0_22] : memref<1x256xf32, #tpu.memory_space<vmem>>, vector<1x256xf32>
    %29 = vector.broadcast %28 : vector<1x256xf32> to vector<8x256xf32>
    %30 = arith.addf %27, %29 : vector<8x256xf32>
    %cst_23 = arith.constant 0.000000e+00 : f32
    %31 = vector.broadcast %cst_23 : f32 to vector<8x256xf32>
    %32 = arith.maximumf %30, %31 : vector<8x256xf32>
    %c0_24 = arith.constant 0 : index
    %c0_25 = arith.constant 0 : index
    %33 = vector.load %arg10[%c0_24, %c0_25] : memref<256x384xf32, #tpu.memory_space<vmem>>, vector<256x384xf32>
    %cst_26 = arith.constant dense<0.000000e+00> : vector<8x384xf32>
    %34 = tpu.matmul %32, %33, %cst_26 {dimension_numbers = #tpu.dot_dimension_numbers<[1], [0], [0], [1], [0, 0, 1, 1], [], []>} : vector<8x256xf32>, vector<256x384xf32>, vector<8x384xf32> -> vector<8x384xf32>
    %c0_27 = arith.constant 0 : index
    %c0_28 = arith.constant 0 : index
    %35 = vector.load %arg11[%c0_27, %c0_28] : memref<1x384xf32, #tpu.memory_space<vmem>>, vector<1x384xf32>
    %36 = vector.broadcast %35 : vector<1x384xf32> to vector<8x384xf32>
    %37 = arith.addf %34, %36 : vector<8x384xf32>
    %38 = vector.extract_strided_slice %37 {offsets = [0, 0], sizes = [8, 128], strides = [1, 1]} : vector<8x384xf32> to vector<8x128xf32>
    %39 = vector.extract_strided_slice %37 {offsets = [0, 128], sizes = [8, 128], strides = [1, 1]} : vector<8x384xf32> to vector<8x128xf32>
    %40 = vector.extract_strided_slice %37 {offsets = [0, 256], sizes = [8, 128], strides = [1, 1]} : vector<8x384xf32> to vector<8x128xf32>
    %41 = arith.mulf %38, %38 : vector<8x128xf32>
    %42 = arith.mulf %39, %39 : vector<8x128xf32>
    %43 = arith.addf %41, %42 : vector<8x128xf32>
    %44 = arith.mulf %40, %40 : vector<8x128xf32>
    %45 = arith.addf %43, %44 : vector<8x128xf32>
    %cst_29 = arith.constant 9.99999974E-6 : f32
    %46 = vector.broadcast %cst_29 : f32 to vector<8x128xf32>
    %47 = arith.addf %45, %46 : vector<8x128xf32>
    %48 = math.rsqrt %47 : vector<8x128xf32>
    %49 = arith.mulf %47, %48 : vector<8x128xf32>
    %50 = arith.mulf %38, %48 : vector<8x128xf32>
    %51 = arith.mulf %39, %48 : vector<8x128xf32>
    %52 = arith.mulf %40, %48 : vector<8x128xf32>
    %53 = math.cos %49 : vector<8x128xf32>
    %54 = math.sin %49 : vector<8x128xf32>
    %cst_30 = arith.constant 1.000000e+00 : f32
    %55 = vector.broadcast %cst_30 : f32 to vector<8x128xf32>
    %56 = arith.subf %55, %53 : vector<8x128xf32>
    %57 = arith.mulf %50, %50 : vector<8x128xf32>
    %58 = arith.mulf %50, %50 : vector<8x128xf32>
    %cst_31 = arith.constant 1.000000e+00 : f32
    %59 = vector.broadcast %cst_31 : f32 to vector<8x128xf32>
    %60 = arith.subf %59, %58 : vector<8x128xf32>
    %61 = arith.mulf %60, %53 : vector<8x128xf32>
    %62 = arith.addf %57, %61 : vector<8x128xf32>
    %63 = arith.mulf %50, %51 : vector<8x128xf32>
    %64 = arith.mulf %63, %56 : vector<8x128xf32>
    %65 = arith.mulf %52, %54 : vector<8x128xf32>
    %66 = arith.subf %64, %65 : vector<8x128xf32>
    %67 = arith.mulf %50, %52 : vector<8x128xf32>
    %68 = arith.mulf %67, %56 : vector<8x128xf32>
    %69 = arith.mulf %51, %54 : vector<8x128xf32>
    %70 = arith.addf %68, %69 : vector<8x128xf32>
    %71 = arith.mulf %50, %51 : vector<8x128xf32>
    %72 = arith.mulf %71, %56 : vector<8x128xf32>
    %73 = arith.mulf %52, %54 : vector<8x128xf32>
    %74 = arith.addf %72, %73 : vector<8x128xf32>
    %75 = arith.mulf %51, %51 : vector<8x128xf32>
    %76 = arith.mulf %51, %51 : vector<8x128xf32>
    %cst_32 = arith.constant 1.000000e+00 : f32
    %77 = vector.broadcast %cst_32 : f32 to vector<8x128xf32>
    %78 = arith.subf %77, %76 : vector<8x128xf32>
    %79 = arith.mulf %78, %53 : vector<8x128xf32>
    %80 = arith.addf %75, %79 : vector<8x128xf32>
    %81 = arith.mulf %51, %52 : vector<8x128xf32>
    %82 = arith.mulf %81, %56 : vector<8x128xf32>
    %83 = arith.mulf %50, %54 : vector<8x128xf32>
    %84 = arith.subf %82, %83 : vector<8x128xf32>
    %85 = arith.mulf %50, %52 : vector<8x128xf32>
    %86 = arith.mulf %85, %56 : vector<8x128xf32>
    %87 = arith.mulf %51, %54 : vector<8x128xf32>
    %88 = arith.subf %86, %87 : vector<8x128xf32>
    %89 = arith.mulf %51, %52 : vector<8x128xf32>
    %90 = arith.mulf %89, %56 : vector<8x128xf32>
    %91 = arith.mulf %50, %54 : vector<8x128xf32>
    %92 = arith.addf %90, %91 : vector<8x128xf32>
    %93 = arith.mulf %52, %52 : vector<8x128xf32>
    %94 = arith.mulf %52, %52 : vector<8x128xf32>
    %cst_33 = arith.constant 1.000000e+00 : f32
    %95 = vector.broadcast %cst_33 : f32 to vector<8x128xf32>
    %96 = arith.subf %95, %94 : vector<8x128xf32>
    %97 = arith.mulf %96, %53 : vector<8x128xf32>
    %98 = arith.addf %93, %97 : vector<8x128xf32>
    %99 = tpu.concatenate %62, %66, %70, %74, %80, %84, %88, %92, %98 in 1 : vector<8x128xf32>, vector<8x128xf32>, vector<8x128xf32>, vector<8x128xf32>, vector<8x128xf32>, vector<8x128xf32>, vector<8x128xf32>, vector<8x128xf32>, vector<8x128xf32> -> vector<8x1152xf32>
    %c0_34 = arith.constant 0 : index
    %c0_35 = arith.constant 0 : index
    %100 = vector.load %arg12[%c0_34, %c0_35] : memref<8x1152xf32, #tpu.memory_space<vmem>>, vector<8x1152xf32>
    tpu.vector_store %arg12[%c0_34, %c0_35], %99 {strides = array<i32>} : memref<8x1152xf32, #tpu.memory_space<vmem>>, vector<8x1152xf32>,
    return
  }
  func.func @transform_0(%arg0: i32) -> (i32, i32) {
    %c0_i32 = arith.constant 0 : i32
    %c0_i32_0 = arith.constant 0 : i32
    return %arg0, %c0_i32 : i32, i32
  }
  func.func @transform_1(%arg0: i32) -> (i32, i32) {
    %c0_i32 = arith.constant 0 : i32
    %c0_i32_0 = arith.constant 0 : i32
    %c0_i32_1 = arith.constant 0 : i32
    return %c0_i32, %c0_i32_0 : i32, i32
  }
  func.func @transform_2(%arg0: i32) -> (i32, i32) {
    %c0_i32 = arith.constant 0 : i32
    %c0_i32_0 = arith.constant 0 : i32
    %c0_i32_1 = arith.constant 0 : i32
    return %c0_i32, %c0_i32_0 : i32, i32
  }
  func.func @transform_3(%arg0: i32) -> (i32, i32) {
    %c0_i32 = arith.constant 0 : i32
    %c0_i32_0 = arith.constant 0 : i32
    %c0_i32_1 = arith.constant 0 : i32
    return %c0_i32, %c0_i32_0 : i32, i32
  }
  func.func @transform_4(%arg0: i32) -> (i32, i32) {
    %c0_i32 = arith.constant 0 : i32
    %c0_i32_0 = arith.constant 0 : i32
    %c0_i32_1 = arith.constant 0 : i32
    return %c0_i32, %c0_i32_0 : i32, i32
  }
  func.func @transform_5(%arg0: i32) -> (i32, i32) {
    %c0_i32 = arith.constant 0 : i32
    %c0_i32_0 = arith.constant 0 : i32
    %c0_i32_1 = arith.constant 0 : i32
    return %c0_i32, %c0_i32_0 : i32, i32
  }
  func.func @transform_6(%arg0: i32) -> (i32, i32) {
    %c0_i32 = arith.constant 0 : i32
    %c0_i32_0 = arith.constant 0 : i32
    %c0_i32_1 = arith.constant 0 : i32
    return %c0_i32, %c0_i32_0 : i32, i32
  }
  func.func @transform_7(%arg0: i32) -> (i32, i32) {
    %c0_i32 = arith.constant 0 : i32
    %c0_i32_0 = arith.constant 0 : i32
    %c0_i32_1 = arith.constant 0 : i32
    return %c0_i32, %c0_i32_0 : i32, i32
  }
  func.func @transform_8(%arg0: i32) -> (i32, i32) {
    %c0_i32 = arith.constant 0 : i32
    %c0_i32_0 = arith.constant 0 : i32
    %c0_i32_1 = arith.constant 0 : i32
    return %c0_i32, %c0_i32_0 : i32, i32
  }
  func.func @transform_9(%arg0: i32) -> (i32, i32) {
    %c0_i32 = arith.constant 0 : i32
    %c0_i32_0 = arith.constant 0 : i32
    %c0_i32_1 = arith.constant 0 : i32
    return %c0_i32, %c0_i32_0 : i32, i32
  }
  func.func @transform_10(%arg0: i32) -> (i32, i32) {
    %c0_i32 = arith.constant 0 : i32
    %c0_i32_0 = arith.constant 0 : i32
    %c0_i32_1 = arith.constant 0 : i32
    return %c0_i32, %c0_i32_0 : i32, i32
  }
  func.func @transform_11(%arg0: i32) -> (i32, i32) {
    %c0_i32 = arith.constant 0 : i32
    %c0_i32_0 = arith.constant 0 : i32
    return %arg0, %c0_i32 : i32, i32
  }
}

</mosaic_0001>

<bundles_post_ra>
// kernel: tpu_custom_call.1
= control target key start
LH: loop header
LB: loop body
LE: loop exit
PB: predicated region body
PF: predicated region fallthrough
CT: control target
= control target key end

     0   :  { %16 = vsyncpa [#allocation3], 0  ;;  %s2374_s0 = inlined_call_operand.hbm [shape: f32[8,69], index: 0, kind: input, shape index: {}]   ;;  %s2375_s1 = inlined_call_operand.hbm [shape: bf16[69,256], index: 1, kind: input, shape index: {}]   ;;  %s2376_s2 = inlined_call_operand.vmem [shape: f32[1,256], index: 2, kind: input, shape index: {}]   ;;  %s2377_s3 = inlined_call_operand.hbm [shape: bf16[256,256], index: 3, kind: input, shape index: {}]   ;;  %s2378_s4 = inlined_call_operand.vmem [shape: f32[1,256], index: 4, kind: input, shape index: {}]   ;;  %s2379_s5 = inlined_call_operand.hbm [shape: bf16[256,256], index: 5, kind: input, shape index: {}]   ;;  %s2380_s6 = inlined_call_operand.vmem [shape: f32[1,256], index: 6, kind: input, shape index: {}]   ;;  %s2381_s7 = inlined_call_operand.hbm [shape: bf16[256,256], index: 7, kind: input, shape index: {}]   ;;  %s2382_s8 = inlined_call_operand.vmem [shape: f32[1,256], index: 8, kind: input, shape index: {}]   ;;  %s2383_s9 = inlined_call_operand.hbm [shape: f32[256,384], index: 9, kind: input, shape index: {}]   ;;  %s2384_s10 = inlined_call_operand.vmem [shape: f32[1,384], index: 10, kind: input, shape index: {}]   ;;  %s2385_s11 = inlined_call_operand.hbm [shape: f32[8,1152], index: 11, kind: output, shape index: {}]  }
   0x1   :  { %17 = vsyncpa [#allocation6], 0 }
   0x2   :  { %18 = vsyncpa [#allocation9], 0 }
   0x3   :  { %19 = vsyncpa [#allocation12], 0 }
   0x4   :  { %20 = vsyncpa [#allocation4], 0  ;;  %s2115_s17 = smov [#allocation5]   ;;  %s1951_s21 = scalar_lea.hbm %s2375_s1, 1152 }
   0x5   :  { %s36_s18 = sshll.u32 %s2115_s17, 4  ;;  %p1952_p0 = scmp.ne.s32.totalorder %s2375_s1, %s1951_s21  ;;  %s37_s18 = int_to_ptr.vmem [resolvable:$true] %s36_s18 }
   0x6   :  { %p1955_p1 = scmp.lt.u32.totalorder %s1951_s21, %s2375_s1 }
   0x8   :  { %p1957_p2 = pnand %p1955_p1, %p1952_p0 }
   0xa   :  { %1960 = shalt.err (!%p1957_p2)
}
   0xb   :  { %s1961_s26 = scalar_lea.vmem %s37_s18, 1152  ;;  %p1966_p4 = scmp.lt.s32.totalorder %s37_s18, %s37_s18 }
   0xc   :  { %p1962_p3 = scmp.ne.s32.totalorder %s37_s18, %s1961_s26  ;;  %p1967_p5 = scmp.lt.s32.totalorder %s1961_s26, %s1961_s26 }
   0xe   :  { %p1968_p6 = por %p1967_p5, %p1966_p4 }
  0x10   :  { %p1969_p7 = pnand %p1968_p6, %p1962_p3 }
  0x12   :  { %1972 = shalt.err (!%p1969_p7)
}
  0x13   :  { %s2116_s27 = smov 128   ;;  %s2117_s28 = smov 8  }
  0x14   :  { %42 = dma.hbm_to_vmem [thread:$0]  %s2375_s1, 1152, %s37_s18, [#allocation6], %s2116_s27, %s2116_s27, %s2117_s28  }
  0x15   :  { %s2118_s12 = smov [#allocation8]   ;;  %s2119_s14 = smov [#allocation2]  }
  0x16   :  { %s64_s13 = sshll.u32 %s2118_s12, 4  ;;  %s27_s15 = sshll.u32 %s2119_s14, 4  ;;  %s65_s13 = int_to_ptr.vmem [resolvable:$true] %s64_s13  ;;  %s28_s15 = int_to_ptr.vmem [resolvable:$true] %s27_s15 }
  0x17   :  { %s1973_s19 = scalar_lea.hbm %s2379_s5, 4096 }
  0x18   :  { %p1974_p8 = scmp.ne.s32.totalorder %s2379_s5, %s1973_s19  ;;  %p1977_p9 = scmp.lt.u32.totalorder %s1973_s19, %s2379_s5 }
  0x1a   :  { %p1979_p10 = pnand %p1977_p9, %p1974_p8 }
  0x1c   :  { %1982 = shalt.err (!%p1979_p10)
}
  0x1d   :  { %s1983_s1 = scalar_lea.vmem %s65_s13, 4096  ;;  %p1988_p12 = scmp.lt.s32.totalorder %s65_s13, %s65_s13 }
  0x1e   :  { %p1984_p11 = scmp.ne.s32.totalorder %s65_s13, %s1983_s1  ;;  %p1989_p13 = scmp.lt.s32.totalorder %s1983_s1, %s1983_s1 }
  0x20   :  { %p1990_p0 = por %p1989_p13, %p1988_p12 }
  0x22   :  { %p1991_p1 = pnand %p1990_p0, %p1984_p11 }
  0x24   :  { %1994 = shalt.err (!%p1991_p1)
}
  0x25   :  { %70 = dma.hbm_to_vmem [thread:$0]  %s2379_s5, 4096, %s65_s13, [#allocation9], %s2116_s27, %s2116_s27, %s2117_s28  }
  0x26   :  { %s1995_s29 = scalar_lea.hbm %s2374_s0, 128 }
  0x27   :  { %p1996_p2 = scmp.ne.s32.totalorder %s2374_s0, %s1995_s29  ;;  %p1999_p3 = scmp.lt.u32.totalorder %s1995_s29, %s2374_s0 }
  0x29   :  { %p2001_p4 = pnand %p1999_p3, %p1996_p2 }
  0x2b   :  { %2004 = shalt.err (!%p2001_p4)
}
  0x2c   :  { %s2005_s17 = scalar_lea.vmem %s28_s15, 128  ;;  %p2010_p6 = scmp.lt.s32.totalorder %s28_s15, %s28_s15 }
  0x2d   :  { %p2006_p5 = scmp.ne.s32.totalorder %s28_s15, %s2005_s17  ;;  %p2011_p7 = scmp.lt.s32.totalorder %s2005_s17, %s2005_s17 }
  0x2f   :  { %p2012_p8 = por %p2011_p7, %p2010_p6 }
  0x31   :  { %p2013_p9 = pnand %p2012_p8, %p2006_p5 }
  0x33   :  { %2016 = shalt.err (!%p2013_p9)
}
  0x34   :  { %30 = dma.hbm_to_vmem [thread:$0]  %s2374_s0, 128, %s28_s15, [#allocation3]  }
  0x35   :  { %s2120_s19 = smov [#allocation7]   ;;  %s2121_s21 = smov [#allocation10]  }
  0x36   :  { %s50_s20 = sshll.u32 %s2120_s19, 4  ;;  %s78_s22 = sshll.u32 %s2121_s21, 4  ;;  %s51_s20 = int_to_ptr.vmem [resolvable:$true] %s50_s20  ;;  %s79_s22 = int_to_ptr.vmem [resolvable:$true] %s78_s22 }
  0x37   :  { %s2017_s18 = scalar_lea.hbm %s2377_s3, 4096 }
  0x38   :  { %p2018_p10 = scmp.ne.s32.totalorder %s2377_s3, %s2017_s18  ;;  %p2021_p11 = scmp.lt.u32.totalorder %s2017_s18, %s2377_s3 }
  0x3a   :  { %p2023_p12 = pnand %p2021_p11, %p2018_p10 }
  0x3c   :  { %2026 = shalt.err (!%p2023_p12)
}
  0x3d   :  { %s2027_s0 = scalar_lea.vmem %s51_s20, 4096  ;;  %p2032_p0 = scmp.lt.s32.totalorder %s51_s20, %s51_s20 }
  0x3e   :  { %p2028_p13 = scmp.ne.s32.totalorder %s51_s20, %s2027_s0  ;;  %p2033_p1 = scmp.lt.s32.totalorder %s2027_s0, %s2027_s0 }
  0x40   :  { %p2034_p2 = por %p2033_p1, %p2032_p0 }
  0x42   :  { %p2035_p3 = pnand %p2034_p2, %p2028_p13 }
  0x44   :  { %2038 = shalt.err (!%p2035_p3)
}
  0x45   :  { %56 = dma.hbm_to_vmem [thread:$0]  %s2377_s3, 4096, %s51_s20, [#allocation6], %s2116_s27, %s2116_s27, %s2117_s28  }
  0x46   :  { %s2039_s16 = scalar_lea.hbm %s2381_s7, 4096 }
  0x47   :  { %p2040_p4 = scmp.ne.s32.totalorder %s2381_s7, %s2039_s16  ;;  %p2043_p5 = scmp.lt.u32.totalorder %s2039_s16, %s2381_s7 }
  0x49   :  { %p2045_p6 = pnand %p2043_p5, %p2040_p4 }
  0x4b   :  { %2048 = shalt.err (!%p2045_p6)
}
  0x4c   :  { %s2049_s21 = scalar_lea.vmem %s79_s22, 4096  ;;  %p2054_p8 = scmp.lt.s32.totalorder %s79_s22, %s79_s22 }
  0x4d   :  { %p2050_p7 = scmp.ne.s32.totalorder %s79_s22, %s2049_s21  ;;  %p2055_p9 = scmp.lt.s32.totalorder %s2049_s21, %s2049_s21 }
  0x4f   :  { %p2056_p10 = por %p2055_p9, %p2054_p8 }
  0x51   :  { %p2057_p11 = pnand %p2056_p10, %p2050_p7 }
  0x53   :  { %2060 = shalt.err (!%p2057_p11)
}
  0x54   :  { %84 = dma.hbm_to_vmem [thread:$0]  %s2381_s7, 4096, %s79_s22, [#allocation9], %s2116_s27, %s2116_s27, %s2117_s28  }
  0x55   :  { %s2122_s23 = smov [#allocation11]   ;;  %s2061_s25 = scalar_lea.hbm %s2383_s9, 12288 }
  0x56   :  { %s92_s1 = sshll.u32 %s2122_s23, 4  ;;  %p2062_p12 = scmp.ne.s32.totalorder %s2383_s9, %s2061_s25  ;;  %s93_s1 = int_to_ptr.vmem [resolvable:$true] %s92_s1 }
  0x57   :  { %p2065_p13 = scmp.lt.u32.totalorder %s2061_s25, %s2383_s9 }
  0x59   :  { %p2067_p0 = pnand %p2065_p13, %p2062_p12 }
  0x5b   :  { %2070 = shalt.err (!%p2067_p0)
}
  0x5c   :  { %s2071_s30 = scalar_lea.vmem %s93_s1, 12288  ;;  %p2076_p2 = scmp.lt.s32.totalorder %s93_s1, %s93_s1 }
  0x5d   :  { %p2072_p1 = scmp.ne.s32.totalorder %s93_s1, %s2071_s30  ;;  %p2077_p3 = scmp.lt.s32.totalorder %s2071_s30, %s2071_s30 }
  0x5f   :  { %p2078_p4 = por %p2077_p3, %p2076_p2 }
  0x61   :  { %p2079_p5 = pnand %p2078_p4, %p2072_p1 }
  0x63   :  { %2082 = shalt.err (!%p2079_p5)
}
  0x64   :  { %s2123_s7 = smov 384   ;;  %s2124_s27 = smov 24  }
  0x65   :  { %98 = dma.hbm_to_vmem [thread:$0]  %s2383_s9, 12288, %s93_s1, [#allocation12], %s2123_s7, %s2123_s7, %s2124_s27  }
  0x66   :  { %2105 = dma.done.wait [#allocation3], 128  }
  0x67   :  { %2106 = vsyncadd [#allocation3], 4294967168 }
  0x68   :  { %2107 = dma.done.wait [#allocation6], 5248  }
  0x69   :  { %2108 = vsyncadd [#allocation6], 4294962048 }
  0x6a   :  { %2109 = dma.done.wait [#allocation9], 8192  }
  0x6b   :  { %2110 = vsyncadd [#allocation9], 4294959104 }
  0x6c   :  { %2111 = dma.done.wait [#allocation12], 12288  }
  0x6d   :  { %2112 = vsyncadd [#allocation12], 4294955008  ;;  %v2125_v0 = vmov 0.0   ;;  %v1789_v1 = vld [vmem:[#allocation5 + $0x4] ss:$8 sps:$4 sm:$0xff]   ;;  %vm163_vm0 = vcmask 1044480  }
  0x6e   :  { %234 = vmatprep.mubr.f32.mxu0 %v2125_v0  ;;  %v1791_v2 = vld [vmem:[#allocation5] ss:$8 sps:$4 sm:$0xff]   ;;  %1360 = vmatprep.subr.bf16.mxu0 %v1789_v1  ;;  %v1792_v3 = vld [vmem:[#allocation5 + $0x14] ss:$8 sps:$4 sm:$0xff]   ;;  %v1794_v4 = vld [vmem:[#allocation5 + $0x10] ss:$8 sps:$4 sm:$0xff]  }
  0x6f   :  { %1362 = vmatpush1.bf16.msra.mxu0 %v1791_v2  ;;  %v1795_v5 = vld [vmem:[#allocation5 + $0x24] ss:$8 sps:$4 sm:$0xff]   ;;  %v1797_v6 = vld [vmem:[#allocation5 + $0x20] ss:$8 sps:$4 sm:$0xff]   ;;  %v1798_v9 = vld [vmem:[#allocation5 + $0x34] ss:$8 sps:$4 sm:$0xff]  }
  0x70   :  { %1364 = vmatprep.subr.bf16.mxu0 %v1792_v3  ;;  %v1801_v7 = vld [vmem:[#allocation7 + $0x4] ss:$8 sps:$4 sm:$0xff]   ;;  %v1803_v8 = vld [vmem:[#allocation7] ss:$8 sps:$4 sm:$0xff]   ;;  %v1804_v10 = vld [vmem:[#allocation7 + $0x14] ss:$8 sps:$4 sm:$0xff]  }
  0x71   :  { %1376 = vmatprep.subr.bf16.mxu1 %v1801_v7  ;;  %v128_v11 = vld [vmem:[#allocation5 + $0x40] sm:$0x77]  ;;  %v1807_v13 = vld [vmem:[#allocation7 + $0x24] ss:$8 sps:$4 sm:$0xff]   ;;  %v1800_v14 = vld [vmem:[#allocation5 + $0x30] ss:$8 sps:$4 sm:$0xff]  }
  0x72   :  { %1378 = vmatpush1.bf16.msra.mxu1 %v1803_v8  ;;  %v1806_v12 = vld [vmem:[#allocation7 + $0x10] ss:$8 sps:$4 sm:$0xff]   ;;  %v146_v15 = vunpack.c.h.bf16 %v128_v11  ;;  %v1809_v16 = vld [vmem:[#allocation7 + $0x20] ss:$8 sps:$4 sm:$0xff]   ;;  %v1810_v17 = vld [vmem:[#allocation7 + $0x34] ss:$8 sps:$4 sm:$0xff]   ;;  %v145_v18 = vunpack.c.l.bf16 %v128_v11  ;;  %v149_v11 = vlaneseq }
  0x73   :  { %1366 = vmatpush1.bf16.msra.mxu0 %v1794_v4  ;;  %1380 = vmatprep.subr.bf16.mxu1 %v1804_v10  ;;  %v119_v19 = vld [vmem:[#allocation2] sm:$0xff]  ;;  %vm159_vm1 = vcmask 564224   ;;  %v1813_v21 = vld [vmem:[#allocation7 + $0x44] ss:$8 sps:$4 sm:$0xff]   ;;  %v1815_v22 = vld [vmem:[#allocation7 + $0x40] ss:$8 sps:$4 sm:$0xff]  }
  0x74   :  { %1368 = vmatprep.subr.bf16.mxu0 %v1795_v5  ;;  %v1812_v20 = vld [vmem:[#allocation7 + $0x30] ss:$8 sps:$4 sm:$0xff]   ;;  %v1816_v23 = vld [vmem:[#allocation7 + $0x54] ss:$8 sps:$4 sm:$0xff]   ;;  %v1819_v25 = vld [vmem:[#allocation7 + $0x64] ss:$8 sps:$4 sm:$0xff]  }
  0x75   :  { %v1818_v24 = vld [vmem:[#allocation7 + $0x50] ss:$8 sps:$4 sm:$0xff]   ;;  %v1821_v26 = vld [vmem:[#allocation7 + $0x60] ss:$8 sps:$4 sm:$0xff]   ;;  %v1822_v27 = vld [vmem:[#allocation7 + $0x74] ss:$8 sps:$4 sm:$0xff]  }
  0x76   :  { %1382 = vmatpush1.bf16.msra.mxu1 %v1806_v12  ;;  %v1824_v28 = vld [vmem:[#allocation7 + $0x70] ss:$8 sps:$4 sm:$0xff]   ;;  %v1825_v29 = vld [vmem:[#allocation7 + $0x84] ss:$8 sps:$4 sm:$0xff]   ;;  %v1827_v30 = vld [vmem:[#allocation7 + $0x80] ss:$8 sps:$4 sm:$0xff]  }
  0x77   :  { %1370 = vmatpush1.bf16.msra.mxu0 %v1797_v6  ;;  %1384 = vmatprep.subr.bf16.mxu1 %v1807_v13  ;;  %v1828_v31 = vld [vmem:[#allocation7 + $0x94] ss:$8 sps:$4 sm:$0xff]   ;;  %v1830_v32 = vld [vmem:[#allocation7 + $0x90] ss:$8 sps:$4 sm:$0xff]   ;;  %v1831_v33 = vld [vmem:[#allocation7 + $0xa4] ss:$8 sps:$4 sm:$0xff]  }
  0x78   :  { %1372 = vmatprep.subr.bf16.mxu0 %v1798_v9  ;;  %v1833_v34 = vld [vmem:[#allocation7 + $0xa0] ss:$8 sps:$4 sm:$0xff]   ;;  %v1834_v35 = vld [vmem:[#allocation7 + $0xb4] ss:$8 sps:$4 sm:$0xff]   ;;  %v1836_v36 = vld [vmem:[#allocation7 + $0xb0] ss:$8 sps:$4 sm:$0xff]  }
  0x79   :  { %v1837_v37 = vld [vmem:[#allocation7 + $0xc4] ss:$8 sps:$4 sm:$0xff]   ;;  %v1839_v38 = vld [vmem:[#allocation7 + $0xc0] ss:$8 sps:$4 sm:$0xff]   ;;  %v1840_v39 = vld [vmem:[#allocation7 + $0xd4] ss:$8 sps:$4 sm:$0xff]  }
  0x7a   :  { %1386 = vmatpush1.bf16.msra.mxu1 %v1809_v16  ;;  %v1842_v40 = vld [vmem:[#allocation7 + $0xd0] ss:$8 sps:$4 sm:$0xff]   ;;  %v1843_v41 = vld [vmem:[#allocation7 + $0xe4] ss:$8 sps:$4 sm:$0xff]   ;;  %v1845_v42 = vld [vmem:[#allocation7 + $0xe0] ss:$8 sps:$4 sm:$0xff]  }
  0x7b   :  { %1374 = vmatpush1.bf16.msra.mxu0 %v1800_v14  ;;  %1388 = vmatprep.subr.bf16.mxu1 %v1810_v17  ;;  %v1846_v43 = vld [vmem:[#allocation7 + $0xf4] ss:$8 sps:$4 sm:$0xff]   ;;  %v1848_v44 = vld [vmem:[#allocation7 + $0xf0] ss:$8 sps:$4 sm:$0xff]   ;;  %v1849_v45 = vld [vmem:[#allocation8 + $0x4] ss:$8 sps:$4 sm:$0xff]  }
  0x7c   :  { %1313 = vmatprep.subr.msk.mxu0 %vm163_vm0, %v146_v15  ;;  %v1851_v46 = vld [vmem:[#allocation8] ss:$8 sps:$4 sm:$0xff]   ;;  %v1852_v47 = vld [vmem:[#allocation8 + $0x14] ss:$8 sps:$4 sm:$0xff]   ;;  %v1854_v48 = vld [vmem:[#allocation8 + $0x10] ss:$8 sps:$4 sm:$0xff]  }
  0x7d   :  { %v1855_v49 = vld [vmem:[#allocation8 + $0x24] ss:$8 sps:$4 sm:$0xff]   ;;  %v1857_v50 = vld [vmem:[#allocation8 + $0x20] ss:$8 sps:$4 sm:$0xff]   ;;  %v1858_v51 = vld [vmem:[#allocation8 + $0x34] ss:$8 sps:$4 sm:$0xff]  }
  0x7e   :  { %1390 = vmatpush1.bf16.msra.mxu1 %v1812_v20  ;;  %v1860_v52 = vld [vmem:[#allocation8 + $0x30] ss:$8 sps:$4 sm:$0xff]   ;;  %v1861_v53 = vld [vmem:[#allocation8 + $0x44] ss:$8 sps:$4 sm:$0xff]   ;;  %v1863_v54 = vld [vmem:[#allocation8 + $0x40] ss:$8 sps:$4 sm:$0xff]  }
  0x7f   :  { %1314 = vmatpush1.msk.msra.mxu0 %vm163_vm0, %v145_v18  ;;  %1392 = vmatprep.subr.bf16.mxu1 %v1813_v21  ;;  %v1864_v55 = vld [vmem:[#allocation8 + $0x54] ss:$8 sps:$4 sm:$0xff]   ;;  %v1866_v56 = vld [vmem:[#allocation8 + $0x50] ss:$8 sps:$4 sm:$0xff]   ;;  %v1867_v57 = vld [vmem:[#allocation8 + $0x64] ss:$8 sps:$4 sm:$0xff]  }
  0x80   :  { %1315 = vmatmul.mubr.msk.f32.vlgmr.msra.gmra.mrb[0].mxu0 %vm159_vm1, %v119_v19  ;;  %1440 = vmatprep.subr.bf16.mxu0 %v1849_v45  ;;  %v1869_v58 = vld [vmem:[#allocation8 + $0x60] ss:$8 sps:$4 sm:$0xff]   ;;  %v1870_v59 = vld [vmem:[#allocation8 + $0x74] ss:$8 sps:$4 sm:$0xff]   ;;  %v1872_v60 = vld [vmem:[#allocation8 + $0x70] ss:$8 sps:$4 sm:$0xff]  }
  0x81   :  { %1442 = vmatpush1.bf16.msra.mxu0 %v1851_v46  ;;  %v1873_v61 = vld [vmem:[#allocation8 + $0x84] ss:$8 sps:$4 sm:$0xff]   ;;  %v1875_v62 = vld [vmem:[#allocation8 + $0x80] ss:$8 sps:$4 sm:$0xff]   ;;  %v1876_v63 = vld [vmem:[#allocation8 + $0x94] ss:$8 sps:$4 sm:$0xff]  }
  0x82   :  { %1394 = vmatpush1.bf16.msra.mxu1 %v1815_v22  ;;  %1444 = vmatprep.subr.bf16.mxu0 %v1852_v47  ;;  %v1878_v0 = vld [vmem:[#allocation8 + $0x90] ss:$8 sps:$4 sm:$0xff]   ;;  %v1879_v1 = vld [vmem:[#allocation8 + $0xa4] ss:$8 sps:$4 sm:$0xff]   ;;  %v1881_v2 = vld [vmem:[#allocation8 + $0xa0] ss:$8 sps:$4 sm:$0xff]  }
  0x83   :  { %1396 = vmatprep.subr.bf16.mxu1 %v1816_v23  ;;  %v1882_v3 = vld [vmem:[#allocation8 + $0xb4] ss:$8 sps:$4 sm:$0xff]   ;;  %v1884_v4 = vld [vmem:[#allocation8 + $0xb0] ss:$8 sps:$4 sm:$0xff]   ;;  %v1885_v5 = vld [vmem:[#allocation8 + $0xc4] ss:$8 sps:$4 sm:$0xff]  }
  0x84   :  { %v1887_v6 = vld [vmem:[#allocation8 + $0xc0] ss:$8 sps:$4 sm:$0xff]   ;;  %v1888_v7 = vld [vmem:[#allocation8 + $0xd4] ss:$8 sps:$4 sm:$0xff]   ;;  %v1890_v8 = vld [vmem:[#allocation8 + $0xd0] ss:$8 sps:$4 sm:$0xff]  }
  0x85   :  { %1446 = vmatpush1.bf16.msra.mxu0 %v1854_v48  ;;  %v1891_v9 = vld [vmem:[#allocation8 + $0xe4] ss:$8 sps:$4 sm:$0xff]   ;;  %v1893_v10 = vld [vmem:[#allocation8 + $0xe0] ss:$8 sps:$4 sm:$0xff]   ;;  %v2277_v12 = vshrl.u32 %v149_v11, 7 }
  0x86   :  { %1398 = vmatpush1.bf16.msra.mxu1 %v1818_v24  ;;  %1448 = vmatprep.subr.bf16.mxu0 %v1855_v49  ;;  %v147_v14 = vld [vmem:[%s2376_s2] sm:$0x3]  ;;  %v1894_v24 = vld [vmem:[#allocation8 + $0xf4] ss:$8 sps:$4 sm:$0xff]   ;;  %v1927_v46 = vld [vmem:[#allocation10 + $0xa4] ss:$8 sps:$4 sm:$0xff]  }
  0x87   :  { %1400 = vmatprep.subr.bf16.mxu1 %v1819_v25  ;;  %v2280_v13 = vsub.s32 0, %v2277_v12  ;;  %v2286_v15 = vsub.s32 1, %v2277_v12  ;;  %v1896_v25 = vld [vmem:[#allocation8 + $0xf0] ss:$8 sps:$4 sm:$0xff]   ;;  %v1929_v47 = vld [vmem:[#allocation10 + $0xa0] ss:$8 sps:$4 sm:$0xff]  }
  0x88   :  { %v1926_v45 = vld [vmem:[#allocation10 + $0x90] ss:$8 sps:$4 sm:$0xff]   ;;  %v1930_v48 = vld [vmem:[#allocation10 + $0xb4] ss:$8 sps:$4 sm:$0xff]  }
  0x89   :  { %1450 = vmatpush1.bf16.msra.mxu0 %v1857_v50  ;;  %v152_v16 = vrot.slane %v147_v14, %v2280_v13  ;;  %v156_v17 = vrot.slane %v147_v14, %v2286_v15  ;;  %v1932_v49 = vld [vmem:[#allocation10 + $0xb0] ss:$8 sps:$4 sm:$0xff]   ;;  %v1933_v50 = vld [vmem:[#allocation10 + $0xc4] ss:$8 sps:$4 sm:$0xff]  }
  0x8a   :  { %1402 = vmatpush1.bf16.msra.mxu1 %v1821_v26  ;;  %1452 = vmatprep.subr.bf16.mxu0 %v1858_v51  ;;  %v1897_v26 = vld [vmem:[#allocation10 + $0x4] ss:$8 sps:$4 sm:$0xff]   ;;  %v1935_v51 = vld [vmem:[#allocation10 + $0xc0] ss:$8 sps:$4 sm:$0xff]   ;;  %v792_v14 = vld [vmem:[#allocation11 + $0x30] sm:$0xff] }
  0x8b   :  { %1404 = vmatprep.subr.bf16.mxu1 %v1822_v27  ;;  %v1899_v27 = vld [vmem:[#allocation10] ss:$8 sps:$4 sm:$0xff]  }
  0x8d   :  { %1454 = vmatpush1.bf16.msra.mxu0 %v1860_v52  ;;  %v1936_v52 = vld [vmem:[#allocation10 + $0xd4] ss:$8 sps:$4 sm:$0xff]  }
  0x8e   :  { %1406 = vmatpush1.bf16.msra.mxu1 %v1824_v28  ;;  %1456 = vmatprep.subr.bf16.mxu0 %v1861_v53  ;;  %v1900_v28 = vld [vmem:[#allocation10 + $0x14] ss:$8 sps:$4 sm:$0xff]   ;;  %v1938_v53 = vld [vmem:[#allocation10 + $0xd0] ss:$8 sps:$4 sm:$0xff]  }
  0x8f   :  { %1408 = vmatprep.subr.bf16.mxu1 %v1825_v29  ;;  %v1902_v29 = vld [vmem:[#allocation10 + $0x10] ss:$8 sps:$4 sm:$0xff]  }
  0x91   :  { %1458 = vmatpush1.bf16.msra.mxu0 %v1863_v54  ;;  %v1939_v54 = vld [vmem:[#allocation10 + $0xe4] ss:$8 sps:$4 sm:$0xff]  }
  0x92   :  { %1410 = vmatpush1.bf16.msra.mxu1 %v1827_v30  ;;  %1460 = vmatprep.subr.bf16.mxu0 %v1864_v55  ;;  %v1903_v30 = vld [vmem:[#allocation10 + $0x24] ss:$8 sps:$4 sm:$0xff]   ;;  %v1941_v55 = vld [vmem:[#allocation10 + $0xe0] ss:$8 sps:$4 sm:$0xff]  }
  0x93   :  { %1412 = vmatprep.subr.bf16.mxu1 %v1828_v31  ;;  %v1905_v31 = vld [vmem:[#allocation10 + $0x20] ss:$8 sps:$4 sm:$0xff]  }
  0x95   :  { %1462 = vmatpush1.bf16.msra.mxu0 %v1866_v56  ;;  %v339_v56 = vld [vmem:[%s2378_s4] sm:$0x3] }
  0x96   :  { %1414 = vmatpush1.bf16.msra.mxu1 %v1830_v32  ;;  %1464 = vmatprep.subr.bf16.mxu0 %v1867_v57  ;;  %v1906_v32 = vld [vmem:[#allocation10 + $0x34] ss:$8 sps:$4 sm:$0xff]   ;;  %v344_v57 = vrot.slane %v339_v56, %v2280_v13 }
  0x97   :  { %1416 = vmatprep.subr.bf16.mxu1 %v1831_v33  ;;  %v1908_v33 = vld [vmem:[#allocation10 + $0x30] ss:$8 sps:$4 sm:$0xff]  }
  0x99   :  { %1466 = vmatpush1.bf16.msra.mxu0 %v1869_v58  ;;  %v348_v58 = vrot.slane %v339_v56, %v2286_v15  ;;  %v835_v56 = vld [vmem:[#allocation11 + $0x188] sm:$0xff] }
  0x9a   :  { %1418 = vmatpush1.bf16.msra.mxu1 %v1833_v34  ;;  %1468 = vmatprep.subr.bf16.mxu0 %v1870_v59  ;;  %v1909_v34 = vld [vmem:[#allocation10 + $0x44] ss:$8 sps:$4 sm:$0xff]  }
  0x9b   :  { %1420 = vmatprep.subr.bf16.mxu1 %v1834_v35  ;;  %v1911_v35 = vld [vmem:[#allocation10 + $0x40] ss:$8 sps:$4 sm:$0xff]  }
  0x9d   :  { %1470 = vmatpush1.bf16.msra.mxu0 %v1872_v60 }
  0x9e   :  { %1422 = vmatpush1.bf16.msra.mxu1 %v1836_v36  ;;  %1472 = vmatprep.subr.bf16.mxu0 %v1873_v61  ;;  %v1912_v36 = vld [vmem:[#allocation10 + $0x54] ss:$8 sps:$4 sm:$0xff]  }
  0x9f   :  { %1424 = vmatprep.subr.bf16.mxu1 %v1837_v37  ;;  %v1914_v37 = vld [vmem:[#allocation10 + $0x50] ss:$8 sps:$4 sm:$0xff]  }
  0xa1   :  { %1474 = vmatpush1.bf16.msra.mxu0 %v1875_v62 }
  0xa2   :  { %1426 = vmatpush1.bf16.msra.mxu1 %v1839_v38  ;;  %1476 = vmatprep.subr.bf16.mxu0 %v1876_v63  ;;  %v1915_v38 = vld [vmem:[#allocation10 + $0x64] ss:$8 sps:$4 sm:$0xff]  }
  0xa3   :  { %1428 = vmatprep.subr.bf16.mxu1 %v1840_v39  ;;  %v1917_v39 = vld [vmem:[#allocation10 + $0x60] ss:$8 sps:$4 sm:$0xff]  }
  0xa5   :  { %1478 = vmatpush1.bf16.msra.mxu0 %v1878_v0 }
  0xa6   :  { %1430 = vmatpush1.bf16.msra.mxu1 %v1842_v40  ;;  %1480 = vmatprep.subr.bf16.mxu0 %v1879_v1  ;;  %v1918_v40 = vld [vmem:[#allocation10 + $0x74] ss:$8 sps:$4 sm:$0xff]  }
  0xa7   :  { %1432 = vmatprep.subr.bf16.mxu1 %v1843_v41  ;;  %v1920_v41 = vld [vmem:[#allocation10 + $0x70] ss:$8 sps:$4 sm:$0xff]   ;;  %v1942_v1 = vld [vmem:[#allocation10 + $0xf4] ss:$8 sps:$4 sm:$0xff]  }
  0xa9   :  { %1482 = vmatpush1.bf16.msra.mxu0 %v1881_v2  ;;  %v1944_v2 = vld [vmem:[#allocation10 + $0xf0] ss:$8 sps:$4 sm:$0xff]  }
  0xaa   :  { %1434 = vmatpush1.bf16.msra.mxu1 %v1845_v42  ;;  %1484 = vmatprep.subr.bf16.mxu0 %v1882_v3  ;;  %v1921_v42 = vld [vmem:[#allocation10 + $0x84] ss:$8 sps:$4 sm:$0xff]  }
  0xab   :  { %1436 = vmatprep.subr.bf16.mxu1 %v1846_v43  ;;  %v1923_v43 = vld [vmem:[#allocation10 + $0x80] ss:$8 sps:$4 sm:$0xff]  }
  0xac   :  { %v787_v3 = vld [vmem:[#allocation11 + $0x8] sm:$0xff] }
  0xad   :  { %1486 = vmatpush1.bf16.msra.mxu0 %v1884_v4  ;;  %v790_v4 = vld [vmem:[#allocation11 + $0x20] sm:$0xff] }
  0xae   :  { %1438 = vmatpush1.bf16.msra.mxu1 %v1848_v44  ;;  %1488 = vmatprep.subr.bf16.mxu0 %v1885_v5  ;;  %v1924_v44 = vld [vmem:[#allocation10 + $0x94] ss:$8 sps:$4 sm:$0xff]   ;;  %v786_v5 = vld [vmem:[#allocation11] sm:$0xff] }
  0xaf   :  { %1504 = vmatprep.subr.bf16.mxu1 %v1897_v26 }
  0xb1   :  { %1490 = vmatpush1.bf16.msra.mxu0 %v1887_v6  ;;  %v1567_v6 = vpack.c.bf16 %v790_v4, %v787_v3  ;;  %v843_v3 = vld [vmem:[#allocation11 + $0x1c8] sm:$0xff] }
  0xb2   :  { %1492 = vmatprep.subr.bf16.mxu0 %v1888_v7  ;;  %v789_v7 = vld [vmem:[#allocation11 + $0x18] sm:$0xff]  ;;  %v847_v4 = vld [vmem:[#allocation11 + $0x1e8] sm:$0xff] }
  0xb5   :  { %1494 = vmatpush1.bf16.msra.mxu0 %v1890_v8  ;;  %v793_v8 = vld [vmem:[#allocation11 + $0x38] sm:$0xff] }
  0xb6   :  { %1496 = vmatprep.subr.bf16.mxu0 %v1891_v9  ;;  %v796_v9 = vld [vmem:[#allocation11 + $0x50] sm:$0xff] }
  0xb7   :  { %v1571_v11 = vpack.c.bf16 %v796_v9, %v793_v8  ;;  %v846_v8 = vld [vmem:[#allocation11 + $0x1e0] sm:$0xff]  ;;  %v849_v9 = vld [vmem:[#allocation11 + $0x1f8] sm:$0xff] }
  0xb9   :  { %1498 = vmatpush1.bf16.msra.mxu0 %v1893_v10  ;;  %v1569_v10 = vpack.c.bf16 %v789_v7, %v786_v5  ;;  %v850_v5 = vld [vmem:[#allocation11 + $0x200] sm:$0xff] }
  0xba   :  { %1500 = vmatprep.subr.bf16.mxu0 %v1894_v24  ;;  %v808_v24 = vld [vmem:[#allocation11 + $0xb0] sm:$0xff]  ;;  %v1607_v7 = vpack.c.bf16 %v850_v5, %v847_v4  ;;  %v815_v5 = vld [vmem:[#allocation11 + $0xe8] sm:$0xff] }
  0xbb   :  { %v812_v4 = vld [vmem:[#allocation11 + $0xd0] sm:$0xff] }
  0xbd   :  { %1502 = vmatpush1.bf16.msra.mxu0 %v1896_v25 }
  0xbe   :  { %1568 = vmatprep.subr.bf16.mxu0 %v1567_v6 }
 0x153   :  { %v236_v18 = vpop.f32.mrb[0].mxu0 }
 0x154   :  { %v237_v19 = vadd.f32 %v236_v18, %v152_v16  ;;  %v238_v20 = vpop.f32.mrb[1].mxu0  ;;  %v795_v16 = vld [vmem:[#allocation11 + $0x48] sm:$0xff]  ;;  %v802_v18 = vld [vmem:[#allocation11 + $0x80] sm:$0xff] }
 0x155   :  { %v239_v21 = vadd.f32 %v238_v20, %v156_v17  ;;  %v799_v17 = vld [vmem:[#allocation11 + $0x68] sm:$0xff] }
 0x156   :  { %v241_v23 = vmax.f32 %v237_v19, 0.0  ;;  %v1573_v19 = vpack.c.bf16 %v795_v16, %v792_v14  ;;  %v1575_v20 = vpack.c.bf16 %v802_v18, %v799_v17  ;;  %v1609_v14 = vpack.c.bf16 %v849_v9, %v846_v8  ;;  %v852_v17 = vld [vmem:[#allocation11 + $0x210] sm:$0xff]  ;;  %v855_v18 = vld [vmem:[#allocation11 + $0x228] sm:$0xff] }
 0x157   :  { %v242_v22 = vmax.f32 %v239_v21, 0.0  ;;  %v798_v21 = vld [vmem:[#allocation11 + $0x60] sm:$0xff]  ;;  %v1649_v8 = vpack.c.bf16 %v815_v5, %v812_v4 }
 0x159   :  { %415 = vmatprep.mubr.f32.mxu1 %v242_v22  ;;  %v801_v22 = vld [vmem:[#allocation11 + $0x78] sm:$0xff] }
 0x15a   :  { %416 = vmatmul.mubr.f32.vlgmr.msra.gmra.mrb[0].mxu1 %v241_v23  ;;  %v805_v23 = vld [vmem:[#allocation11 + $0x98] sm:$0xff]  ;;  %v1577_v25 = vpack.c.bf16 %v801_v22, %v798_v21  ;;  %v1613_v21 = vpack.c.bf16 %v855_v18, %v852_v17 }
 0x15b   :  { %1506 = vmatpush1.bf16.msra.mxu1 %v1899_v27  ;;  %v1579_v26 = vpack.c.bf16 %v808_v24, %v805_v23  ;;  %v804_v27 = vld [vmem:[#allocation11 + $0x90] sm:$0xff]  ;;  %v858_v23 = vld [vmem:[#allocation11 + $0x240] sm:$0xff]  ;;  %v861_v24 = vld [vmem:[#allocation11 + $0x258] sm:$0xff] }
 0x15c   :  { %1508 = vmatprep.subr.bf16.mxu1 %v1900_v28  ;;  %v807_v28 = vld [vmem:[#allocation11 + $0xa8] sm:$0xff] }
 0x15f   :  { %1510 = vmatpush1.bf16.msra.mxu1 %v1902_v29  ;;  %v811_v29 = vld [vmem:[#allocation11 + $0xc8] sm:$0xff] }
 0x160   :  { %1512 = vmatprep.subr.bf16.mxu1 %v1903_v30  ;;  %v814_v30 = vld [vmem:[#allocation11 + $0xe0] sm:$0xff] }
 0x163   :  { %1514 = vmatpush1.bf16.msra.mxu1 %v1905_v31  ;;  %v836_v31 = vld [vmem:[#allocation11 + $0x190] sm:$0xff] }
 0x164   :  { %1516 = vmatprep.subr.bf16.mxu1 %v1906_v32  ;;  %v839_v32 = vld [vmem:[#allocation11 + $0x1a8] sm:$0xff] }
 0x167   :  { %1518 = vmatpush1.bf16.msra.mxu1 %v1908_v33  ;;  %v1581_v33 = vpack.c.bf16 %v807_v28, %v804_v27  ;;  %v1617_v27 = vpack.c.bf16 %v861_v24, %v858_v23  ;;  %v827_v23 = vld [vmem:[#allocation11 + $0x148] sm:$0xff] }
 0x168   :  { %1520 = vmatprep.subr.bf16.mxu1 %v1909_v34  ;;  %v1631_v34 = vpack.c.bf16 %v839_v32, %v836_v31  ;;  %v871_v31 = vld [vmem:[#allocation11 + $0x2a8] sm:$0xff]  ;;  %v874_v32 = vld [vmem:[#allocation11 + $0x2c0] sm:$0xff] }
 0x16b   :  { %1522 = vmatpush1.bf16.msra.mxu1 %v1911_v35  ;;  %v1583_v35 = vpack.c.bf16 %v814_v30, %v811_v29  ;;  %v864_v29 = vld [vmem:[#allocation11 + $0x270] sm:$0xff]  ;;  %v867_v30 = vld [vmem:[#allocation11 + $0x288] sm:$0xff] }
 0x16c   :  { %1524 = vmatprep.subr.bf16.mxu1 %v1912_v36  ;;  %v810_v36 = vld [vmem:[#allocation11 + $0xc0] sm:$0xff] }
 0x16f   :  { %1526 = vmatpush1.bf16.msra.mxu1 %v1914_v37  ;;  %v813_v37 = vld [vmem:[#allocation11 + $0xd8] sm:$0xff] }
 0x170   :  { %1528 = vmatprep.subr.bf16.mxu1 %v1915_v38  ;;  %v817_v38 = vld [vmem:[#allocation11 + $0xf8] sm:$0xff] }
 0x173   :  { %1530 = vmatpush1.bf16.msra.mxu1 %v1917_v39  ;;  %v820_v39 = vld [vmem:[#allocation11 + $0x110] sm:$0xff] }
 0x174   :  { %1532 = vmatprep.subr.bf16.mxu1 %v1918_v40  ;;  %v1585_v40 = vpack.c.bf16 %v813_v37, %v810_v36 }
 0x177   :  { %1534 = vmatpush1.bf16.msra.mxu1 %v1920_v41  ;;  %v1587_v41 = vpack.c.bf16 %v820_v39, %v817_v38 }
 0x178   :  { %1536 = vmatprep.subr.bf16.mxu1 %v1921_v42  ;;  %v816_v42 = vld [vmem:[#allocation11 + $0xf0] sm:$0xff] }
 0x17b   :  { %1538 = vmatpush1.bf16.msra.mxu1 %v1923_v43  ;;  %v819_v43 = vld [vmem:[#allocation11 + $0x108] sm:$0xff] }
 0x17c   :  { %1540 = vmatprep.subr.bf16.mxu1 %v1924_v44  ;;  %v823_v44 = vld [vmem:[#allocation11 + $0x128] sm:$0xff] }
 0x17f   :  { %1542 = vmatpush1.bf16.msra.mxu1 %v1926_v45  ;;  %v826_v45 = vld [vmem:[#allocation11 + $0x140] sm:$0xff] }
 0x180   :  { %1544 = vmatprep.subr.bf16.mxu1 %v1927_v46  ;;  %v1589_v46 = vpack.c.bf16 %v819_v43, %v816_v42  ;;  %v791_v42 = vld [vmem:[#allocation11 + $0x28] sm:$0xff] }
 0x183   :  { %1546 = vmatpush1.bf16.msra.mxu1 %v1929_v47  ;;  %v1591_v47 = vpack.c.bf16 %v826_v45, %v823_v44  ;;  %v842_v44 = vld [vmem:[#allocation11 + $0x1c0] sm:$0xff]  ;;  %v845_v45 = vld [vmem:[#allocation11 + $0x1d8] sm:$0xff] }
 0x184   :  { %1548 = vmatprep.subr.bf16.mxu1 %v1930_v48  ;;  %v822_v48 = vld [vmem:[#allocation11 + $0x120] sm:$0xff] }
 0x187   :  { %1550 = vmatpush1.bf16.msra.mxu1 %v1932_v49  ;;  %v825_v49 = vld [vmem:[#allocation11 + $0x138] sm:$0xff] }
 0x188   :  { %1552 = vmatprep.subr.bf16.mxu1 %v1933_v50  ;;  %v829_v50 = vld [vmem:[#allocation11 + $0x158] sm:$0xff] }
 0x18b   :  { %1554 = vmatpush1.bf16.msra.mxu1 %v1935_v51  ;;  %v832_v51 = vld [vmem:[#allocation11 + $0x170] sm:$0xff] }
 0x18c   :  { %1556 = vmatprep.subr.bf16.mxu1 %v1936_v52  ;;  %v1593_v52 = vpack.c.bf16 %v825_v49, %v822_v48  ;;  %v1635_v49 = vpack.c.bf16 %v845_v45, %v842_v44 }
 0x18f   :  { %1558 = vmatpush1.bf16.msra.mxu1 %v1938_v53  ;;  %v1595_v53 = vpack.c.bf16 %v832_v51, %v829_v50  ;;  %v794_v50 = vld [vmem:[#allocation11 + $0x40] sm:$0xff]  ;;  %v797_v51 = vld [vmem:[#allocation11 + $0x58] sm:$0xff] }
 0x190   :  { %1560 = vmatprep.subr.bf16.mxu1 %v1939_v54  ;;  %v828_v54 = vld [vmem:[#allocation11 + $0x150] sm:$0xff] }
 0x193   :  { %1562 = vmatpush1.bf16.msra.mxu1 %v1941_v55  ;;  %v831_v55 = vld [vmem:[#allocation11 + $0x168] sm:$0xff] }
 0x194   :  { %1564 = vmatprep.subr.bf16.mxu1 %v1942_v1 }
 0x197   :  { %1566 = vmatpush1.bf16.msra.mxu1 %v1944_v2  ;;  %v840_v2 = vld [vmem:[#allocation11 + $0x1b0] sm:$0xff] }
 0x198   :  { %1632 = vmatprep.subr.bf16.mxu1 %v1631_v34  ;;  %v1605_v6 = vpack.c.bf16 %v843_v3, %v840_v2  ;;  %v1623_v34 = vpack.c.bf16 %v874_v32, %v871_v31  ;;  %v879_v31 = vld [vmem:[#allocation11 + $0x2e8] sm:$0xff] }
 0x22d   :  { %v417_v59 = vpop.f32.mrb[0].mxu1 }
 0x22e   :  { %v418_v60 = vadd.f32 %v417_v59, %v344_v57  ;;  %v419_v61 = vpop.f32.mrb[1].mxu1  ;;  %v838_v57 = vld [vmem:[#allocation11 + $0x1a0] sm:$0xff] }
 0x22f   :  { %v420_v62 = vadd.f32 %v419_v61, %v348_v58  ;;  %v1597_v58 = vpack.c.bf16 %v831_v55, %v828_v54  ;;  %v1599_v59 = vpack.c.bf16 %v838_v57, %v835_v56  ;;  %v837_v61 = vld [vmem:[#allocation11 + $0x198] sm:$0xff]  ;;  %v1637_v54 = vpack.c.bf16 %v797_v51, %v794_v50  ;;  %v800_v56 = vld [vmem:[#allocation11 + $0x70] sm:$0xff]  ;;  %v803_v57 = vld [vmem:[#allocation11 + $0x88] sm:$0xff] }
 0x230   :  { %v422_v0 = vmax.f32 %v418_v60, 0.0  ;;  %v834_v60 = vld [vmem:[#allocation11 + $0x180] sm:$0xff] }
 0x231   :  { %v423_v63 = vmax.f32 %v420_v62, 0.0  ;;  %v841_v62 = vld [vmem:[#allocation11 + $0x1b8] sm:$0xff] }
 0x233   :  { %596 = vmatprep.mubr.f32.mxu0 %v423_v63  ;;  %v844_v63 = vld [vmem:[#allocation11 + $0x1d0] sm:$0xff] }
 0x234   :  { %597 = vmatmul.mubr.f32.vlgmr.msra.gmra.mrb[2].mxu0 %v422_v0  ;;  %v1601_v0 = vpack.c.bf16 %v837_v61, %v834_v60  ;;  %v1603_v1 = vpack.c.bf16 %v844_v63, %v841_v62  ;;  %v1641_v60 = vpack.c.bf16 %v803_v57, %v800_v56  ;;  %v806_v62 = vld [vmem:[#allocation11 + $0xa0] sm:$0xff]  ;;  %v809_v63 = vld [vmem:[#allocation11 + $0xb8] sm:$0xff] }
 0x235   :  { %1570 = vmatpush1.bf16.msra.mxu0 %v1569_v10  ;;  %v853_v10 = vld [vmem:[#allocation11 + $0x218] sm:$0xff]  ;;  %v1645_v2 = vpack.c.bf16 %v809_v63, %v806_v62 }
 0x236   :  { %1572 = vmatprep.subr.bf16.mxu0 %v1571_v11  ;;  %v856_v11 = vld [vmem:[#allocation11 + $0x230] sm:$0xff] }
 0x237   :  { %v1611_v16 = vpack.c.bf16 %v856_v11, %v853_v10  ;;  %v818_v10 = vld [vmem:[#allocation11 + $0x100] sm:$0xff]  ;;  %v821_v11 = vld [vmem:[#allocation11 + $0x118] sm:$0xff] }
 0x238   :  { %v1653_v17 = vpack.c.bf16 %v821_v11, %v818_v10 }
 0x239   :  { %1574 = vmatpush1.bf16.msra.mxu0 %v1573_v19  ;;  %v859_v19 = vld [vmem:[#allocation11 + $0x248] sm:$0xff] }
 0x23a   :  { %1576 = vmatprep.subr.bf16.mxu0 %v1575_v20  ;;  %v862_v20 = vld [vmem:[#allocation11 + $0x260] sm:$0xff] }
 0x23b   :  { %v1615_v22 = vpack.c.bf16 %v862_v20, %v859_v19  ;;  %v870_v19 = vld [vmem:[#allocation11 + $0x2a0] sm:$0xff]  ;;  %v873_v20 = vld [vmem:[#allocation11 + $0x2b8] sm:$0xff] }
 0x23d   :  { %1578 = vmatpush1.bf16.msra.mxu0 %v1577_v25  ;;  %v865_v25 = vld [vmem:[#allocation11 + $0x278] sm:$0xff] }
 0x23e   :  { %1580 = vmatprep.subr.bf16.mxu0 %v1579_v26  ;;  %v868_v26 = vld [vmem:[#allocation11 + $0x290] sm:$0xff] }
 0x23f   :  { %v1619_v28 = vpack.c.bf16 %v868_v26, %v865_v25  ;;  %v877_v25 = vld [vmem:[#allocation11 + $0x2d8] sm:$0xff]  ;;  %v880_v26 = vld [vmem:[#allocation11 + $0x2f0] sm:$0xff] }
 0x241   :  { %1582 = vmatpush1.bf16.msra.mxu0 %v1581_v33  ;;  %v1621_v33 = vpack.c.bf16 %v867_v30, %v864_v29  ;;  %v881_v29 = vld [vmem:[#allocation11 + $0x2f8] sm:$0xff]  ;;  %v876_v30 = vld [vmem:[#allocation11 + $0x2d0] sm:$0xff] }
 0x242   :  { %1584 = vmatprep.subr.bf16.mxu0 %v1583_v35  ;;  %v520_v35 = vld [vmem:[%s2380_s6] sm:$0x3] }
 0x243   :  { %v525_v36 = vrot.slane %v520_v35, %v2280_v13  ;;  %v529_v37 = vrot.slane %v520_v35, %v2286_v15  ;;  %v833_v35 = vld [vmem:[#allocation11 + $0x178] sm:$0xff] }
 0x245   :  { %1586 = vmatpush1.bf16.msra.mxu0 %v1585_v40 }
 0x246   :  { %1588 = vmatprep.subr.bf16.mxu0 %v1587_v41  ;;  %v788_v41 = vld [vmem:[#allocation11 + $0x10] sm:$0xff] }
 0x249   :  { %1590 = vmatpush1.bf16.msra.mxu0 %v1589_v46 }
 0x24a   :  { %1592 = vmatprep.subr.bf16.mxu0 %v1591_v47  ;;  %v1633_v47 = vpack.c.bf16 %v791_v42, %v788_v41 }
 0x24d   :  { %1594 = vmatpush1.bf16.msra.mxu0 %v1593_v52  ;;  %v848_v52 = vld [vmem:[#allocation11 + $0x1f0] sm:$0xff] }
 0x24e   :  { %1596 = vmatprep.subr.bf16.mxu0 %v1595_v53  ;;  %v851_v53 = vld [vmem:[#allocation11 + $0x208] sm:$0xff] }
 0x24f   :  { %v1639_v55 = vpack.c.bf16 %v851_v53, %v848_v52 }
 0x251   :  { %1598 = vmatpush1.bf16.msra.mxu0 %v1597_v58  ;;  %v854_v58 = vld [vmem:[#allocation11 + $0x220] sm:$0xff] }
 0x252   :  { %1600 = vmatprep.subr.bf16.mxu0 %v1599_v59  ;;  %v857_v59 = vld [vmem:[#allocation11 + $0x238] sm:$0xff] }
 0x253   :  { %v1643_v61 = vpack.c.bf16 %v857_v59, %v854_v58 }
 0x255   :  { %1602 = vmatpush1.bf16.msra.mxu0 %v1601_v0  ;;  %v860_v0 = vld [vmem:[#allocation11 + $0x250] sm:$0xff] }
 0x256   :  { %1604 = vmatprep.subr.bf16.mxu0 %v1603_v1  ;;  %v863_v1 = vld [vmem:[#allocation11 + $0x268] sm:$0xff] }
 0x257   :  { %v1647_v3 = vpack.c.bf16 %v863_v1, %v860_v0 }
 0x259   :  { %1606 = vmatpush1.bf16.msra.mxu0 %v1605_v6  ;;  %v866_v6 = vld [vmem:[#allocation11 + $0x280] sm:$0xff] }
 0x25a   :  { %1608 = vmatprep.subr.bf16.mxu0 %v1607_v7  ;;  %v869_v7 = vld [vmem:[#allocation11 + $0x298] sm:$0xff] }
 0x25b   :  { %v1651_v9 = vpack.c.bf16 %v869_v7, %v866_v6 }
 0x25d   :  { %1610 = vmatpush1.bf16.msra.mxu0 %v1609_v14  ;;  %v872_v14 = vld [vmem:[#allocation11 + $0x2b0] sm:$0xff] }
 0x25e   :  { %1612 = vmatprep.subr.bf16.mxu0 %v1611_v16  ;;  %v875_v16 = vld [vmem:[#allocation11 + $0x2c8] sm:$0xff] }
 0x25f   :  { %v1655_v18 = vpack.c.bf16 %v875_v16, %v872_v14 }
 0x261   :  { %1614 = vmatpush1.bf16.msra.mxu0 %v1613_v21  ;;  %v824_v21 = vld [vmem:[#allocation11 + $0x130] sm:$0xff] }
 0x262   :  { %1616 = vmatprep.subr.bf16.mxu0 %v1615_v22  ;;  %v1625_v22 = vpack.c.bf16 %v873_v20, %v870_v19  ;;  %v1657_v24 = vpack.c.bf16 %v827_v23, %v824_v21  ;;  %v2126_v19 = vmov 683565275   ;;  %v2127_v21 = vmov 2475754826  }
 0x265   :  { %1618 = vmatpush1.bf16.msra.mxu0 %v1617_v27  ;;  %v878_v27 = vld [vmem:[#allocation11 + $0x2e0] sm:$0xff] }
 0x266   :  { %1620 = vmatprep.subr.bf16.mxu0 %v1619_v28  ;;  %v1627_v28 = vpack.c.bf16 %v880_v26, %v877_v25  ;;  %v1659_v32 = vpack.c.bf16 %v881_v29, %v878_v27  ;;  %v2129_v27 = vmov 2102212464  }
 0x269   :  { %1622 = vmatpush1.bf16.msra.mxu0 %v1621_v33  ;;  %v1629_v33 = vpack.c.bf16 %v879_v31, %v876_v30  ;;  %v2130_v30 = vmov 920167782  }
 0x26a   :  { %1624 = vmatprep.subr.bf16.mxu0 %v1623_v34  ;;  %v830_v34 = vld [vmem:[#allocation11 + $0x160] sm:$0xff] }
 0x26d   :  { %1626 = vmatpush1.bf16.msra.mxu0 %v1625_v22 }
 0x26e   :  { %1628 = vmatprep.subr.bf16.mxu0 %v1627_v28 }
 0x271   :  { %1630 = vmatpush1.bf16.msra.mxu0 %v1629_v33  ;;  %v2131_v33 = vmov 1326507024  }
 0x307   :  { %v598_v38 = vpop.f32.mrb[2].mxu0 }
 0x308   :  { %v599_v39 = vadd.f32 %v598_v38, %v525_v36  ;;  %v600_v40 = vpop.f32.mrb[3].mxu0  ;;  %v1661_v36 = vpack.c.bf16 %v833_v35, %v830_v34 }
 0x309   :  { %v601_v43 = vadd.f32 %v600_v40, %v529_v37  ;;  %v701_v37 = vld [vmem:[%s2382_s8] sm:$0x3]  ;;  %s2132_s8 = smov [#allocation13]  }
 0x30a   :  { %v603_v48 = vmax.f32 %v599_v39, 0.0  ;;  %v706_v38 = vrot.slane %v701_v37, %v2280_v13  ;;  %v710_v39 = vrot.slane %v701_v37, %v2286_v15 }
 0x30b   :  { %v604_v46 = vmax.f32 %v601_v43, 0.0 }
 0x30d   :  { %777 = vmatprep.mubr.f32.mxu1 %v604_v46  ;;  %v882_v46 = vld [vmem:[%s2384_s10] sm:$0x7]  ;;  %s1301_s10 = sshll.u32 %s2132_s8, 4  ;;  %s1302_s10 = int_to_ptr.vmem [resolvable:$true] %s1301_s10 }
 0x30e   :  { %778 = vmatmul.mubr.f32.vlgmr.msra.gmra.mrb[2].mxu1 %v603_v48  ;;  %v887_v48 = vrot.slane %v882_v46, %v2280_v13  ;;  %s2083_s19 = scalar_lea.vmem %s1302_s10, 1152  ;;  %p2088_p7 = scmp.lt.s32.totalorder %s1302_s10, %s1302_s10 }
 0x30f   :  { %1634 = vmatpush3.bf16.msra.mxu1 %v1633_v47  ;;  %v894_v47 = vsub.s32 2, %v2277_v12  ;;  %p2084_p6 = scmp.ne.s32.totalorder %s1302_s10, %s2083_s19  ;;  %p2089_p8 = scmp.lt.s32.totalorder %s2083_s19, %s2083_s19 }
 0x310   :  { %1636 = vmatprep.subr.bf16.mxu1 %v1635_v49  ;;  %v891_v49 = vrot.slane %v882_v46, %v2286_v15 }
 0x311   :  { %v895_v52 = vrot.slane %v882_v46, %v894_v47  ;;  %p2090_p9 = por %p2089_p8, %p2088_p7 }
 0x313   :  { %1638 = vmatpush3.bf16.msra.mxu1 %v1637_v54  ;;  %p2091_p10 = pnand %p2090_p9, %p2084_p6 }
 0x314   :  { %1640 = vmatprep.subr.bf16.mxu1 %v1639_v55 }
 0x317   :  { %1642 = vmatpush3.bf16.msra.mxu1 %v1641_v60 }
 0x318   :  { %1644 = vmatprep.subr.bf16.mxu1 %v1643_v61 }
 0x31b   :  { %1646 = vmatpush3.bf16.msra.mxu1 %v1645_v2 }
 0x31c   :  { %1648 = vmatprep.subr.bf16.mxu1 %v1647_v3 }
 0x31f   :  { %1650 = vmatpush3.bf16.msra.mxu1 %v1649_v8 }
 0x320   :  { %1652 = vmatprep.subr.bf16.mxu1 %v1651_v9 }
 0x323   :  { %1654 = vmatpush3.bf16.msra.mxu1 %v1653_v17 }
 0x324   :  { %1656 = vmatprep.subr.bf16.mxu1 %v1655_v18 }
 0x327   :  { %1658 = vmatpush3.bf16.msra.mxu1 %v1657_v24  ;;  %v2128_v24 = vmov 2131351028  }
 0x328   :  { %1660 = vmatprep.subr.bf16.mxu1 %v1659_v32 }
 0x32b   :  { %1662 = vmatpush3.bf16.msra.mxu1 %v1661_v36 }
 0x3e1   :  { %v779_v40 = vpop.f32.mrb[2].mxu1 }
 0x3e2   :  { %v780_v41 = vadd.f32 %v779_v40, %v706_v38  ;;  %v781_v42 = vpop.f32.mrb[3].mxu1 }
 0x3e3   :  { %v782_v43 = vadd.f32 %v781_v42, %v710_v39 }
 0x3e4   :  { %v784_v45 = vmax.f32 %v780_v41, 0.0 }
 0x3e5   :  { %v785_v44 = vmax.f32 %v782_v43, 0.0 }
 0x3e7   :  { %963 = vmatprep.mubr.f32.mxu0 %v785_v44  ;;  %1034 = vmatprep.mubr.f32.mxu1 %v785_v44 }
 0x3e8   :  { %964 = vmatmul.mubr.f32.vlgmr.msra.gmra.mrb[4].mxu0 %v784_v45  ;;  %1035 = vmatmul.mubr.f32.vlgmr.msra.gmra.mrb[4].mxu1 %v784_v45 }
 0x4bb   :  { %v965_v50 = vpop.f32.mrb[4].mxu0  ;;  %v1356_v51 = vpop.f32.mrb[4].mxu1 }
 0x4bc   :  { %v966_v53 = vadd.f32 %v965_v50, %v887_v48  ;;  %v967_v54 = vpop.f32.mrb[5].mxu0  ;;  %v1357_v55 = vpop.f32.mrb[5].mxu1 }
 0x4bd   :  { %v968_v56 = vadd.f32 %v967_v54, %v891_v49  ;;  %v1358_v57 = vadd.f32 %v1357_v55, %v1356_v51 }
 0x4be   :  { %v1040_v58 = vmul.f32 %v966_v53, %v966_v53 }
 0x4bf   :  { %v1041_v59 = vmul.f32 %v968_v56, %v968_v56  ;;  %v1037_v60 = vadd.f32 %v1358_v57, %v895_v52 }
 0x4c1   :  { %v1042_v61 = vadd.f32 %v1041_v59, %v1040_v58  ;;  %v1043_v62 = vmul.f32 %v1037_v60, %v1037_v60 }
 0x4c3   :  { %v1044_v63 = vadd.f32 %v1043_v62, %v1042_v61 }
 0x4c5   :  { %v1045_v0 = vadd.f32 1e-05, %v1044_v63 }
 0x4c7   :  { %1945 = vrsqrt.f32 %v1045_v0 }
 0x4d1   :  { %v1946_v12 = vpop.eup %1945 }
 0x4d2   :  { %v2311_v13 = vmul.f32 %v1946_v12, %v1045_v0  ;;  %v2313_v15 = vmul.f32 %v1946_v12, %v966_v53  ;;  %v2315_v1 = vmul.f32 %v1946_v12, %v968_v56  ;;  %v2317_v2 = vmul.f32 %v1946_v12, %v1037_v60 }
 0x4d4   :  { %v1054_v3 = vand.u32 2139095040, %v2311_v13  ;;  %v2322_v4 = vmul.f32 %v2315_v1, %v2313_v15  ;;  %v2326_v5 = vmul.f32 %v2317_v2, %v2313_v15  ;;  %v2330_v7 = vmul.f32 %v2317_v2, %v2315_v1 }
 0x4d5   :  { %v1051_v10 = vand.u32 2147483647, %v2311_v13  ;;  %vm1053_vm9 = vcmp.lt.s32.totalorder %v2311_v13, 0  ;;  %vm1143_vm1 = vweird.f32 %v2311_v13 }
 0x4d6   :  { %v1055_v6 = vshrl.u32 %v1054_v3, 23 }
 0x4d7   :  { %v1058_v16 = vand.u32 8388607, %v1051_v10  ;;  %vm1052_vm10 = vcmp.le.f32.partialorder %v1051_v10, 0.7853982 }
 0x4d8   :  { %v1316_v8 = vadd.s32 4294967169, %v1055_v6 }
 0x4d9   :  { %v1059_v35 = vor.u32 8388608, %v1058_v16 }
 0x4da   :  { %v1061_v9 = vadd.s32 1, %v1316_v8 }
 0x4db   :  { %v1099_v49 = vshll.u32 %v1059_v35, 8 }
 0x4dc   :  { %vm1062_vm2 = vcmp.gt.s32.totalorder %v1061_v9, 0 }
 0x4dd   :  { %v1063_v11 = vsel %vm1062_vm2, %v1061_v9, 0 }
 0x4de   :  { %v1065_v14 = vand.u32 31, %v1063_v11  ;;  %v1064_v18 = vshrl.u32 %v1063_v11, 5 }
 0x4e0   :  { %v1066_v17 = vsub.s32 32, %v1065_v14  ;;  %v1068_v20 = vshll.u32 %v2126_v19, %v1065_v14  ;;  %v1071_v22 = vshll.u32 %v2127_v21, %v1065_v14  ;;  %v1074_v26 = vshll.u32 %v2128_v24, %v1065_v14 }
 0x4e1   :  { %v1077_v29 = vshll.u32 %v2129_v27, %v1065_v14  ;;  %v1080_v32 = vshll.u32 %v2130_v30, %v1065_v14  ;;  %vm1083_vm3 = vcmp.lt.s32.totalorder %v1064_v18, 1  ;;  %vm1086_vm4 = vcmp.lt.s32.totalorder %v1064_v18, 4 }
 0x4e2   :  { %v1069_v23 = vshrl.u32 %v2127_v21, %v1066_v17  ;;  %v1072_v25 = vshrl.u32 %v2128_v24, %v1066_v17  ;;  %v1075_v28 = vshrl.u32 %v2129_v27, %v1066_v17  ;;  %v1078_v31 = vshrl.u32 %v2130_v30, %v1066_v17 }
 0x4e3   :  { %v1081_v34 = vshrl.u32 %v2131_v33, %v1066_v17  ;;  %v1067_v44 = vshrl.u32 %v2126_v19, %v1066_v17  ;;  %vm1085_vm5 = vcmp.lt.s32.totalorder %v1064_v18, 3  ;;  %vm1084_vm6 = vcmp.lt.s32.totalorder %v1064_v18, 2 }
 0x4e4   :  { %v1070_v36 = vor.u32 %v1069_v23, %v1068_v20  ;;  %v1073_v37 = vor.u32 %v1072_v25, %v1071_v22  ;;  %v1076_v38 = vor.u32 %v1075_v28, %v1074_v26  ;;  %v1079_v39 = vor.u32 %v1078_v31, %v1077_v29 }
 0x4e5   :  { %v1082_v40 = vor.u32 %v1081_v34, %v1080_v32 }
 0x4e6   :  { %v1088_v41 = vsel %vm1086_vm4, %v1076_v38, 2102212464  ;;  %v1091_v42 = vsel %vm1083_vm3, %v1070_v36, %v1073_v37  ;;  %v1095_v43 = vsel %vm1083_vm3, %v1073_v37, %v1076_v38  ;;  %v1092_v45 = vsel %vm1086_vm4, %v1079_v39, 920167782 }
 0x4e7   :  { %v1096_v46 = vsel %vm1086_vm4, %v1082_v40, 1326507024  ;;  %v1093_v47 = vsel %vm1085_vm5, %v1076_v38, %v1092_v45  ;;  %v1087_v50 = vsel %vm1083_vm3, %v1067_v44, %v1070_v36  ;;  %v1089_v51 = vsel %vm1085_vm5, %v1073_v37, %v1088_v41 }
 0x4e8   :  { %v1097_v48 = vsel %vm1085_vm5, %v1079_v39, %v1096_v46  ;;  %v1094_v52 = vsel %vm1084_vm6, %v1091_v42, %v1093_v47  ;;  %v1090_v58 = vsel %vm1084_vm6, %v1087_v50, %v1089_v51  ;;  %v1259_v40 = vmul.f32 %v2313_v15, %v2313_v15 }
 0x4e9   :  { %v1098_v53 = vsel %vm1084_vm6, %v1095_v43, %v1097_v48  ;;  %v2338_v56 = vmul.u32.u64.low %v1099_v49, %v1094_v52  ;;  %v2339_v57 = vmul.u32.u64.high %v1099_v49, %v1094_v52, %v2338_v56  ;;  %v1106_v60 = vmul.u32 %v1099_v49, %v1090_v58 }
 0x4ea   :  { %v2335_v54 = vmul.u32.u64.low %v1099_v49, %v1098_v53  ;;  %v2336_v55 = vmul.u32.u64.high %v1099_v49, %v1098_v53, %v2335_v54  ;;  %v1272_v41 = vmul.f32 %v2315_v1, %v2315_v1  ;;  %v1282_v42 = vmul.f32 %v2317_v2, %v2317_v2 }
 0x4eb   :  { %v1109_v59 = vadd.s32 1, %v2339_v57  ;;  %v1260_v49 = vsub.f32 1.0, %v1259_v40 }
 0x4ec   :  { %vm1108_vm7 = vc.u32 %v2336_v55, %v2338_v56  ;;  %v1107_v16 = vadd.s32 %v2338_v56, %v2336_v55  ;;  %v1273_v52 = vsub.f32 1.0, %v1272_v41  ;;  %v1283_v53 = vsub.f32 1.0, %v1282_v42 }
 0x4ed   :  { %v1110_v61 = vsel %vm1108_vm7, %v1109_v59, %v2339_v57 }
 0x4ee   :  { %v1111_v62 = vadd.s32 %v1110_v61, %v1106_v60 }
 0x4f0   :  { %v1112_v63 = vadd.s32 536870912, %v1111_v62 }
 0x4f2   :  { %v1113_v0 = vshrl.u32 %v1112_v63, 30 }
 0x4f4   :  { %v1114_v12 = vshll.u32 %v1113_v0, 30  ;;  %v1137_v28 = vsub.s32 4, %v1113_v0 }
 0x4f6   :  { %v1115_v3 = vsub.s32 %v1111_v62, %v1114_v12  ;;  %v1138_v31 = vsel %vm1053_vm9, %v1137_v28, %v1113_v0 }
 0x4f7   :  { %v1140_v33 = vsel %vm1052_vm10, 0, %v1138_v31 }
 0x4f8   :  { %v1117_v6 = vsub.s32 0, %v1115_v3  ;;  %v1247_v34 = vadd.s32 3, %v1140_v33  ;;  %v1144_v35 = vand.u32 3, %v1140_v33 }
 0x4fa   :  { %v1317_v8 = vmin.u32 %v1117_v6, %v1115_v3  ;;  %v1248_v36 = vand.u32 3, %v1247_v34  ;;  %vm1149_vm11 = vcmp.eq.s32.totalorder %v1144_v35, 2  ;;  %vm1146_vm13 = vcmp.eq.s32.totalorder %v1144_v35, 0 }
 0x4fb   :  { %vm1145_vm15 = vcmp.lt.s32.totalorder %v1144_v35, 2 }
 0x4fc   :  { %v1119_v9 = vclz %v1317_v8  ;;  %vm1253_vm12 = vcmp.eq.s32.totalorder %v1248_v36, 2  ;;  %vm1250_vm14 = vcmp.eq.s32.totalorder %v1248_v36, 0  ;;  %vm1249_vm0 = vcmp.lt.s32.totalorder %v1248_v36, 2 }
 0x4fe   :  { %v1318_v11 = vadd.s32 4294967294, %v1119_v9 }
 0x500   :  { %vm1319_vm8 = vcmp.lt.s32.totalorder %v1318_v11, 0 }
 0x501   :  { %v1122_v14 = vsel %vm1319_vm8, 0, %v1318_v11 }
 0x502   :  { %v1123_v17 = vsub.s32 32, %v1122_v14  ;;  %v1127_v18 = vsub.s32 4294967266, %v1122_v14  ;;  %v1124_v19 = vshll.u32 %v1115_v3, %v1122_v14 }
 0x504   :  { %v1125_v20 = vshrl.u32 %v1107_v16, %v1123_v17  ;;  %v1128_v21 = vadd.s32 127, %v1127_v18 }
 0x506   :  { %v1126_v22 = vor.u32 %v1125_v20, %v1124_v19  ;;  %v1129_v23 = vshll.u32 %v1128_v21, 23 }
 0x508   :  { %v1130_v24 = vor.u32 4788187, %v1129_v23  ;;  %v1133_v26 = vcvt.s32.f32 %v1126_v22 }
 0x50a   :  { %v1131_v25 = vand.u32 2147483647, %v1130_v24 }
 0x50c   :  { %v1134_v27 = vmul.f32 %v1133_v26, %v1131_v25 }
 0x50e   :  { %v1135_v29 = vxor.u32 2147483648, %v1134_v27 }
 0x510   :  { %v1136_v30 = vsel %vm1053_vm9, %v1135_v29, %v1134_v27 }
 0x511   :  { %v1139_v32 = vsel %vm1052_vm10, %v2311_v13, %v1136_v30 }
 0x512   :  { %1947 = vcosq.f32 %v1139_v32 }
 0x513   :  { %1949 = vsinq.f32 %v1139_v32 }
 0x51c   :  { %v1948_v37 = vpop.eup %1947 }
 0x51d   :  { %v1950_v38 = vpop.eup %1949  ;;  %v1150_v39 = vxor.u32 2147483648, %v1948_v37 }
 0x51e   :  { %v1147_v10 = vxor.u32 2147483648, %v1950_v38 }
 0x51f   :  { %v1151_v43 = vsel %vm1149_vm11, %v1150_v39, %v1950_v38  ;;  %v1255_v44 = vsel %vm1253_vm12, %v1150_v39, %v1950_v38 }
 0x520   :  { %v1148_v45 = vsel %vm1146_vm13, %v1948_v37, %v1147_v10  ;;  %v1252_v46 = vsel %vm1250_vm14, %v1948_v37, %v1147_v10 }
 0x521   :  { %v1152_v47 = vsel %vm1145_vm15, %v1148_v45, %v1151_v43  ;;  %v1256_v48 = vsel %vm1249_vm0, %v1252_v46, %v1255_v44 }
 0x522   :  { %v1153_v50 = vsel %vm1143_vm1, nan, %v1152_v47  ;;  %v1257_v51 = vsel %vm1143_vm1, nan, %v1256_v48 }
 0x523   :  { %v1258_v54 = vsub.f32 1.0, %v1153_v50  ;;  %v1261_v55 = vmul.f32 %v1260_v49, %v1153_v50  ;;  %v1265_v56 = vmul.f32 %v1257_v51, %v2317_v2  ;;  %v1269_v57 = vmul.f32 %v1257_v51, %v2315_v1 }
 0x524   :  { %v1274_v58 = vmul.f32 %v1273_v52, %v1153_v50  ;;  %v1278_v59 = vmul.f32 %v1257_v51, %v2313_v15  ;;  %v1284_v60 = vmul.f32 %v1283_v53, %v1153_v50 }
 0x525   :  { %v1262_v61 = vadd.f32 %v1261_v55, %v1259_v40  ;;  %v1264_v13 = vmul.f32 %v2322_v4, %v1258_v54  ;;  %v1268_v62 = vmul.f32 %v2326_v5, %v1258_v54  ;;  %v1277_v63 = vmul.f32 %v2330_v7, %v1258_v54 }
 0x526   :  { %v1275_v0 = vadd.f32 %v1274_v58, %v1272_v41  ;;  %v1285_v12 = vadd.f32 %v1284_v60, %v1282_v42 }
 0x527   :  { %v1266_v3 = vsub.f32 %v1264_v13, %v1265_v56  ;;  %v1270_v6 = vadd.f32 %v1269_v57, %v1268_v62  ;;  %v1271_v2 = vadd.f32 %v1265_v56, %v1264_v13  ;;  %v1279_v8 = vsub.f32 %v1277_v63, %v1278_v59  ;;  %1286 = vst [vmem:[#allocation13] sm:$0xff] %v1262_v61 }
 0x528   :  { %v1280_v1 = vsub.f32 %v1268_v62, %v1269_v57  ;;  %v1281_v9 = vadd.f32 %v1278_v59, %v1277_v63  ;;  %1290 = vst [vmem:[#allocation13 + $0x20] sm:$0xff] %v1275_v0  ;;  %1294 = vst [vmem:[#allocation13 + $0x40] sm:$0xff] %v1285_v12 }
 0x529   :  { %1287 = vst [vmem:[#allocation13 + $0x8] sm:$0xff] %v1266_v3  ;;  %1288 = vst [vmem:[#allocation13 + $0x10] sm:$0xff] %v1270_v6 }
 0x52a   :  { %1289 = vst [vmem:[#allocation13 + $0x18] sm:$0xff] %v1271_v2  ;;  %1291 = vst [vmem:[#allocation13 + $0x28] sm:$0xff] %v1279_v8 }
 0x52b   :  { %1292 = vst [vmem:[#allocation13 + $0x30] sm:$0xff] %v1280_v1  ;;  %1293 = vst [vmem:[#allocation13 + $0x38] sm:$0xff] %v1281_v9 }
 0x52c   :  { %2094 = shalt.err (!%p2091_p10)
}
 0x52d   :  { %s2095_s20 = scalar_lea.hbm %s2385_s11, 1152 }
 0x52e   :  { %p2096_p11 = scmp.ne.s32.totalorder %s2385_s11, %s2095_s20  ;;  %p2099_p12 = scmp.lt.u32.totalorder %s2095_s20, %s2385_s11 }
 0x530   :  { %p2101_p13 = pnand %p2099_p12, %p2096_p11 }
 0x532   :  { %2104 = shalt.err (!%p2101_p13)
}
 0x533   :  { %1304 = dma.vmem_to_hbm [thread:$0]  %s1302_s10, 1152, %s2385_s11, [#allocation4]  }
 0x534   :  { %2113 = dma.done.wait [#allocation4], 1152  }
 0x535   :  { %2114 = vsyncadd [#allocation4], 4294966144 }
 0x536   :  { %1308 = vsyncpa [#allocation3], 1 }
 0x537   :  { %1309 = vsyncpa [#allocation6], 1 }
 0x538   :  { %1310 = vsyncpa [#allocation9], 1 }
 0x539   :  { %1311 = vsyncpa [#allocation12], 1 }
 0x53a   :  { %1312 = vsyncpa [#allocation4], 1 }

</bundles_post_ra>
